<compile_context>
chip_gen: v6e
topology: v6e:2x2x1
jax: 0.10.0
libtpu: 0.0.40
codegen_flags: <defaults>
</compile_context>

<pallas_src>
import functools
import math

import jax
import jax.numpy as jnp
from jax.experimental import pallas as pl
from jax.experimental.pallas import tpu as pltpu

_VMEM_LIMIT = 32 * 1024 * 1024  # explicit scoped-VMEM limit; safe on v5e/v6e/v7x


def _round_up(x, m):
    return ((x + m - 1) // m) * m


# ----------------------------------------------------------------------------
# in-kernel helpers
# ----------------------------------------------------------------------------
def _layernorm(x, gamma, beta, eps=1e-5):
    # PyTorch nn.LayerNorm: biased variance over last dim, eps inside rsqrt. f32.
    x = x.astype(jnp.float32)
    mu = jnp.mean(x, axis=-1, keepdims=True)
    var = jnp.mean((x - mu) ** 2, axis=-1, keepdims=True)
    return (x - mu) * jax.lax.rsqrt(var + eps) * gamma + beta


def _gelu_exact(x):
    # nn.GELU() default = exact erf formulation (kept for fidelity).
    # TODO(synk): tanh-approx GELU would route through EUP and free VPU slots.
    return 0.5 * x * (1.0 + jax.lax.erf(x * (1.0 / math.sqrt(2.0))))


# ----------------------------------------------------------------------------
# kernel: row-tiled linear  (x @ W + b), bf16 operands, f32 accumulation
# ----------------------------------------------------------------------------
def _linear_kernel(x_ref, w_ref, b_ref, o_ref):
    x = x_ref[...].astype(jnp.bfloat16)
    o_ref[...] = (
        jnp.dot(x, w_ref[...], preferred_element_type=jnp.float32) + b_ref[...]
    )


def linear_rows(x2d, w_bf16, b, *, tile_rows=256):
    M, K = x2d.shape
    D = w_bf16.shape[1]
    tm = min(tile_rows, _round_up(M, 8))
    Mp = _round_up(M, tm)
    if Mp != M:
        x2d = jnp.pad(x2d, ((0, Mp - M), (0, 0)))
    out = pl.pallas_call(
        _linear_kernel,
        out_shape=jax.ShapeDtypeStruct((Mp, D), jnp.float32),
        grid=(Mp // tm,),
        in_specs=[
            pl.BlockSpec((tm, K), lambda i: (i, 0)),
            pl.BlockSpec((K, D), lambda i: (0, 0)),   # weight stays resident
            pl.BlockSpec((1, D), lambda i: (0, 0)),
        ],
        out_specs=pl.BlockSpec((tm, D), lambda i: (i, 0)),
        compiler_params=pltpu.CompilerParams(
            dimension_semantics=("parallel",),
            vmem_limit_bytes=_VMEM_LIMIT),
    )(x2d, w_bf16, b.reshape(1, D))
    return out[:M] if Mp != M else out


# ----------------------------------------------------------------------------
# kernel: attention block  x = x + Wo(softmax(Q K^T * scale) V)(Wqkv(LN1(x)))
#   grid = (B, heads); per-head weights arrive as lane-dense (D, dh)/(dh, D)
#   blocks; LN1(x) cached in scratch; head outputs accumulated in VMEM f32.
# ----------------------------------------------------------------------------
def _attn_kernel(x_ref, ln1g, ln1b, wq_ref, wk_ref, wv_ref, wo_ref, bo_ref,
                 o_ref, hnorm, acc, *, scale):
    hh = pl.program_id(1)
    x = x_ref[0]                                        # (N, D) f32

    @pl.when(hh == 0)
    def _():
        hnorm[...] = _layernorm(x, ln1g[...], ln1b[...])
        acc[...] = jnp.zeros_like(acc)

    hn = hnorm[...].astype(jnp.bfloat16)                # (N, D) bf16
    q = jnp.dot(hn, wq_ref[0], preferred_element_type=jnp.float32)   # (N, dh)
    k = jnp.dot(hn, wk_ref[0], preferred_element_type=jnp.float32)
    v = jnp.dot(hn, wv_ref[0], preferred_element_type=jnp.float32)

    dots = jax.lax.dot_general(
        q.astype(jnp.bfloat16), k.astype(jnp.bfloat16),
        (((1,), (1,)), ((), ())),
        preferred_element_type=jnp.float32) * scale                   # (N, N)
    dots = dots - jnp.max(dots, axis=-1, keepdims=True)
    p = jnp.exp(dots)
    p = p * pl.reciprocal(jnp.sum(p, axis=-1, keepdims=True), approx=True)

    oh = jnp.dot(p.astype(jnp.bfloat16), v.astype(jnp.bfloat16),
                 preferred_element_type=jnp.float32)                  # (N, dh)
    # concat(heads) @ Wo  ==  sum_h  oh @ Wo[h]
    acc[...] += jnp.dot(oh.astype(jnp.bfloat16), wo_ref[0],
                        preferred_element_type=jnp.float32)           # (N, D)

    @pl.when(hh == pl.num_programs(1) - 1)
    def _():
        o_ref[0] = x + acc[...] + bo_ref[...]


def attention_block(x, p, *, heads, dim_head):
    B, N, D = x.shape
    scale = dim_head ** (-0.5)
    kernel = functools.partial(_attn_kernel, scale=scale)
    return pl.pallas_call(
        kernel,
        out_shape=jax.ShapeDtypeStruct((B, N, D), jnp.float32),
        grid=(B, heads),
        in_specs=[
            pl.BlockSpec((1, N, D), lambda b, hd: (b, 0, 0)),   # x resident over heads
            pl.BlockSpec((1, D), lambda b, hd: (0, 0)),          # ln1 gamma
            pl.BlockSpec((1, D), lambda b, hd: (0, 0)),          # ln1 beta
            pl.BlockSpec((1, D, dim_head), lambda b, hd: (hd, 0, 0)),  # Wq[h]
            pl.BlockSpec((1, D, dim_head), lambda b, hd: (hd, 0, 0)),  # Wk[h]
            pl.BlockSpec((1, D, dim_head), lambda b, hd: (hd, 0, 0)),  # Wv[h]
            pl.BlockSpec((1, dim_head, D), lambda b, hd: (hd, 0, 0)),  # Wo[h]
            pl.BlockSpec((1, D), lambda b, hd: (0, 0)),          # bo
        ],
        out_specs=pl.BlockSpec((1, N, D), lambda b, hd: (b, 0, 0)),
        scratch_shapes=[
            pltpu.VMEM((N, D), jnp.float32),    # LN1(x), computed once per b
            pltpu.VMEM((N, D), jnp.float32),    # multi-head output accumulator
        ],
        compiler_params=pltpu.CompilerParams(
            dimension_semantics=("parallel", "arbitrary"),
            vmem_limit_bytes=_VMEM_LIMIT),
    )(x, p["ln1_g"], p["ln1_b"], p["wq"], p["wk"], p["wv"], p["wo"], p["bo"])


# ----------------------------------------------------------------------------
# kernel: feed-forward block  x = x + W2(GELU(W1(LN2(x)))), row-tiled
# ----------------------------------------------------------------------------
def _ffn_kernel(x_ref, ln2g, ln2b, w1_ref, b1_ref, w2_ref, b2_ref, o_ref):
    x = x_ref[...]                                                    # (tm, D)
    h = _layernorm(x, ln2g[...], ln2b[...]).astype(jnp.bfloat16)
    h = jnp.dot(h, w1_ref[...], preferred_element_type=jnp.float32) + b1_ref[...]
    h = _gelu_exact(h).astype(jnp.bfloat16)
    h = jnp.dot(h, w2_ref[...], preferred_element_type=jnp.float32) + b2_ref[...]
    o_ref[...] = x + h


def ffn_block(x, p, *, tile_rows=256):
    B, N, D = x.shape
    mlp_dim = p["w1"].shape[1]
    rows = B * N
    x2d = x.reshape(rows, D)
    tm = min(tile_rows, _round_up(rows, 8))
    Mp = _round_up(rows, tm)
    if Mp != rows:
        x2d = jnp.pad(x2d, ((0, Mp - rows), (0, 0)))
    out = pl.pallas_call(
        _ffn_kernel,
        out_shape=jax.ShapeDtypeStruct((Mp, D), jnp.float32),
        grid=(Mp // tm,),
        in_specs=[
            pl.BlockSpec((tm, D), lambda i: (i, 0)),
            pl.BlockSpec((1, D), lambda i: (0, 0)),
            pl.BlockSpec((1, D), lambda i: (0, 0)),
            pl.BlockSpec((D, mlp_dim), lambda i: (0, 0)),   # W1 resident
            pl.BlockSpec((1, mlp_dim), lambda i: (0, 0)),
            pl.BlockSpec((mlp_dim, D), lambda i: (0, 0)),   # W2 resident
            pl.BlockSpec((1, D), lambda i: (0, 0)),
        ],
        out_specs=pl.BlockSpec((tm, D), lambda i: (i, 0)),
        compiler_params=pltpu.CompilerParams(
            dimension_semantics=("parallel",),
            vmem_limit_bytes=_VMEM_LIMIT),
    )(x2d, p["ln2_g"], p["ln2_b"], p["w1"], p["b1"], p["w2"], p["b2"])
    out = out[:rows] if Mp != rows else out
    return out.reshape(B, N, D)


# ----------------------------------------------------------------------------
# kernel: mlp_head = LayerNorm + Linear on pooled token (lane-padded classes)
# ----------------------------------------------------------------------------
def _head_kernel(x_ref, g_ref, b_ref, w_ref, bias_ref, o_ref):
    h = _layernorm(x_ref[...], g_ref[...], b_ref[...]).astype(jnp.bfloat16)
    o_ref[...] = (
        jnp.dot(h, w_ref[...], preferred_element_type=jnp.float32) + bias_ref[...]
    )


def mlp_head(x, gamma, beta, w_bf16, bias):
    B, D = x.shape
    C = w_bf16.shape[1]
    Cp = _round_up(C, 128)        # lane-dense output => unmasked stores
    if Cp != C:
        w_bf16 = jnp.pad(w_bf16, ((0, 0), (0, Cp - C)))
        bias = jnp.pad(bias, ((0, Cp - C),))
    out = pl.pallas_call(
        _head_kernel,
        out_shape=jax.ShapeDtypeStruct((B, Cp), jnp.float32),
        grid=(1,),
        in_specs=[
            pl.BlockSpec((B, D), lambda i: (0, 0)),
            pl.BlockSpec((1, D), lambda i: (0, 0)),
            pl.BlockSpec((1, D), lambda i: (0, 0)),
            pl.BlockSpec((D, Cp), lambda i: (0, 0)),
            pl.BlockSpec((1, Cp), lambda i: (0, 0)),
        ],
        out_specs=pl.BlockSpec((B, Cp), lambda i: (0, 0)),
        compiler_params=pltpu.CompilerParams(
            dimension_semantics=("arbitrary",),
            vmem_limit_bytes=_VMEM_LIMIT),
    )(x, gamma.reshape(1, D), beta.reshape(1, D), w_bf16, bias.reshape(1, Cp))
    return out[:, :C] if Cp != C else out


# ----------------------------------------------------------------------------
# full ViT forward (glue in plain JAX, compute in Pallas kernels above)
# ----------------------------------------------------------------------------
def vit_forward(img, params, *, patch_size, heads, dim_head, pool="cls"):
    B, C, H, W = img.shape
    p = patch_size
    h, w = H // p, W // p

    # rearrange 'b c (h p1) (w p2) -> b (h w) (p1 p2 c)'   (pure layout glue)
    x = img.reshape(B, C, h, p, w, p)
    x = x.transpose(0, 2, 4, 3, 5, 1)            # b, h, w, p1, p2, c
    x = x.reshape(B, h * w, p * p * C)           # (B, num_patches, patch_dim)

    num_patches, patch_dim = x.shape[1], x.shape[2]
    D = params["patch_w"].shape[1]

    # patch_to_embedding (row-tiled Pallas matmul)
    x = linear_rows(x.reshape(B * num_patches, patch_dim),
                    params["patch_w"], params["patch_b"])
    x = x.reshape(B, num_patches, D)

    # cls token + positional embedding (emb dropout rate 0.0 -> identity)
    cls = jnp.broadcast_to(params["cls_token"], (B, 1, D))
    x = jnp.concatenate([cls, x], axis=1)
    x = x + params["pos_embedding"][:, :num_patches + 1]

    # transformer encoder stack: attention + FFN Pallas kernels per layer
    # TODO(synk): cross-pallas_call prefetch of layer i+1 weights (P10) for
    # HBM-bound small-batch cases.
    for layer_params in params["layers"]:
        x = attention_block(x, layer_params, heads=heads, dim_head=dim_head)
        x = ffn_block(x, layer_params)

    # pool ('cls' -> take token 0)
    pooled = jnp.mean(x, axis=1) if pool == "mean" else x[:, 0]

    # mlp_head (Pallas LN + linear kernel)
    return mlp_head(pooled, params["head_g"], params["head_b"],
                    params["head_w"], params["head_bias"])


# ----------------------------------------------------------------------------
# deterministic parameter initialization (synthetic; shapes follow __init__)
# Matmul weights are stored bf16 (f32 accumulation in-kernel); LN/bias f32.
# ----------------------------------------------------------------------------
def init_vit_params(key, *, image_size, patch_size, num_classes, dim, depth,
                    heads, dim_head, mlp_dim, channels):
    num_patches = (image_size // patch_size) ** 2
    patch_dim = channels * patch_size ** 2
    inner = heads * dim_head
    bf16 = jnp.bfloat16

    def dense(k, fan_in, fan_out):
        kw, kb = jax.random.split(k)
        lim = 1.0 / math.sqrt(fan_in)
        wgt = jax.random.uniform(kw, (fan_in, fan_out), jnp.float32, -lim, lim)
        bia = jax.random.uniform(kb, (fan_out,), jnp.float32, -lim, lim)
        return wgt, bia

    keys = jax.random.split(key, 4 + depth)
    params = {}
    params["pos_embedding"] = jax.random.normal(
        keys[0], (1, num_patches + 1, dim), jnp.float32)
    params["cls_token"] = jax.random.normal(keys[1], (1, 1, dim), jnp.float32)
    pw, pb = dense(keys[2], patch_dim, dim)
    params["patch_w"] = pw.astype(bf16)
    params["patch_b"] = pb

    layers = []
    for li in range(depth):
        lk = jax.random.split(keys[3 + li], 4)
        wqkv, _ = dense(lk[0], dim, inner * 3)          # to_qkv has bias=False
        wo, bo = dense(lk[1], inner, dim)
        w1, b1 = dense(lk[2], dim, mlp_dim)
        w2, b2 = dense(lk[3], mlp_dim, dim)
        # (dim, 3*inner) -> (3, heads, dim, dim_head): per-head lane-dense blocks
        wqkv_h = wqkv.reshape(dim, 3, heads, dim_head).transpose(1, 2, 0, 3)
        layers.append(dict(
            ln1_g=jnp.ones((1, dim), jnp.float32),
            ln1_b=jnp.zeros((1, dim), jnp.float32),
            wq=wqkv_h[0].astype(bf16),                     # (heads, dim, dim_head)
            wk=wqkv_h[1].astype(bf16),
            wv=wqkv_h[2].astype(bf16),
            wo=wo.reshape(heads, dim_head, dim).astype(bf16),
            bo=bo.reshape(1, dim),
            ln2_g=jnp.ones((1, dim), jnp.float32),
            ln2_b=jnp.zeros((1, dim), jnp.float32),
            w1=w1.astype(bf16), b1=b1.reshape(1, mlp_dim),
            w2=w2.astype(bf16), b2=b2.reshape(1, dim),
        ))
    params["layers"] = layers

    params["head_g"] = jnp.ones((dim,), jnp.float32)
    params["head_b"] = jnp.zeros((dim,), jnp.float32)
    hw, hb = dense(jax.random.fold_in(keys[0], 99), dim, num_classes)
    params["head_w"] = hw.astype(bf16)
    params["head_bias"] = hb
    return params


# ----------------------------------------------------------------------------
if __name__ == "__main__":
    # Small config: 16x16 image, patch 2 -> 64 patches (> MIN_NUM_PATCHES=16)
    B, C, IMG, P = 2, 4, 16, 2
    DIM, DEPTH, HEADS, DIM_HEAD, MLP_DIM, NUM_CLASSES = 32, 2, 4, 8, 64, 10

    root = jax.random.PRNGKey(0)
    k_param, k_img = jax.random.split(root)

    params = init_vit_params(
        k_param, image_size=IMG, patch_size=P, num_classes=NUM_CLASSES,
        dim=DIM, depth=DEPTH, heads=HEADS, dim_head=DIM_HEAD,
        mlp_dim=MLP_DIM, channels=C)

    img = jax.random.normal(k_img, (B, C, IMG, IMG), jnp.float32)

    fwd = jax.jit(functools.partial(
        vit_forward, patch_size=P, heads=HEADS, dim_head=DIM_HEAD, pool="cls"))
    logits = fwd(img, params)
    jax.block_until_ready(logits)

    assert logits.shape == (B, NUM_CLASSES), logits.shape
    assert bool(jnp.all(jnp.isfinite(logits)))
    print("KERNEL_OK")
</pallas_src>

<mosaic_0001>
module attributes {stable_mosaic.version = 11 : i64} {
  func.func @_linear_kernel(%arg0: i32, %arg1: memref<128x16xf32, #tpu.memory_space<vmem>>, %arg2: memref<16x32xbf16, #tpu.memory_space<vmem>>, %arg3: memref<1x32xf32, #tpu.memory_space<vmem>>, %arg4: memref<128x32xf32, #tpu.memory_space<vmem>>) attributes {dimension_semantics = [#tpu.dimension_semantics<parallel>], iteration_bounds = array<i64: 1>, scalar_prefetch = 0 : i64, scratch_operands = 0 : i64, tpu.core_type = #tpu.core_type<tc>, window_params = [{transform_indices = @transform_0, window_bounds = array<i64: 128, 16>}, {pipeline_mode = #tpu.pipeline_mode<synchronous>, transform_indices = @transform_1, window_bounds = array<i64: 16, 32>}, {pipeline_mode = #tpu.pipeline_mode<synchronous>, transform_indices = @transform_2, window_bounds = array<i64: 1, 32>}, {transform_indices = @transform_3, window_bounds = array<i64: 128, 32>}]} {
    %c0 = arith.constant 0 : index
    %c0_0 = arith.constant 0 : index
    %0 = vector.load %arg1[%c0, %c0_0] : memref<128x16xf32, #tpu.memory_space<vmem>>, vector<128x16xf32>
    %1 = arith.truncf %0 : vector<128x16xf32> to vector<128x16xbf16>
    %c0_1 = arith.constant 0 : index
    %c0_2 = arith.constant 0 : index
    %2 = vector.load %arg2[%c0_1, %c0_2] : memref<16x32xbf16, #tpu.memory_space<vmem>>, vector<16x32xbf16>
    %cst = arith.constant dense<0.000000e+00> : vector<128x32xf32>
    %3 = tpu.matmul %1, %2, %cst {dimension_numbers = #tpu.dot_dimension_numbers<[1], [0], [0], [1], [0, 0, 1, 1], [], []>} : vector<128x16xbf16>, vector<16x32xbf16>, vector<128x32xf32> -> vector<128x32xf32>
    %c0_3 = arith.constant 0 : index
    %c0_4 = arith.constant 0 : index
    %4 = vector.load %arg3[%c0_3, %c0_4] : memref<1x32xf32, #tpu.memory_space<vmem>>, vector<1x32xf32>
    %5 = vector.broadcast %4 : vector<1x32xf32> to vector<128x32xf32>
    %6 = arith.addf %3, %5 : vector<128x32xf32>
    %c0_5 = arith.constant 0 : index
    %c0_6 = arith.constant 0 : index
    %7 = vector.load %arg4[%c0_5, %c0_6] : memref<128x32xf32, #tpu.memory_space<vmem>>, vector<128x32xf32>
    tpu.vector_store %arg4[%c0_5, %c0_6], %6 {strides = array<i32>} : memref<128x32xf32, #tpu.memory_space<vmem>>, vector<128x32xf32>,
    return
  }
  func.func @transform_0(%arg0: i32) -> (i32, i32) {
    %c0_i32 = arith.constant 0 : i32
    %c0_i32_0 = arith.constant 0 : i32
    return %arg0, %c0_i32 : i32, i32
  }
  func.func @transform_1(%arg0: i32) -> (i32, i32) {
    %c0_i32 = arith.constant 0 : i32
    %c0_i32_0 = arith.constant 0 : i32
    %c0_i32_1 = arith.constant 0 : i32
    return %c0_i32, %c0_i32_0 : i32, i32
  }
  func.func @transform_2(%arg0: i32) -> (i32, i32) {
    %c0_i32 = arith.constant 0 : i32
    %c0_i32_0 = arith.constant 0 : i32
    %c0_i32_1 = arith.constant 0 : i32
    return %c0_i32, %c0_i32_0 : i32, i32
  }
  func.func @transform_3(%arg0: i32) -> (i32, i32) {
    %c0_i32 = arith.constant 0 : i32
    %c0_i32_0 = arith.constant 0 : i32
    return %arg0, %c0_i32 : i32, i32
  }
}

module attributes {stable_mosaic.version = 11 : i64} {
  func.func @_attn_kernel(%arg0: i32, %arg1: i32, %arg2: memref<1x65x32xf32, #tpu.memory_space<vmem>>, %arg3: memref<1x32xf32, #tpu.memory_space<vmem>>, %arg4: memref<1x32xf32, #tpu.memory_space<vmem>>, %arg5: memref<1x32x8xbf16, #tpu.memory_space<vmem>>, %arg6: memref<1x32x8xbf16, #tpu.memory_space<vmem>>, %arg7: memref<1x32x8xbf16, #tpu.memory_space<vmem>>, %arg8: memref<1x8x32xbf16, #tpu.memory_space<vmem>>, %arg9: memref<1x32xf32, #tpu.memory_space<vmem>>, %arg10: memref<1x65x32xf32, #tpu.memory_space<vmem>>, %arg11: memref<65x32xf32, #tpu.memory_space<vmem>>, %arg12: memref<65x32xf32, #tpu.memory_space<vmem>>) attributes {dimension_semantics = [#tpu.dimension_semantics<parallel>, #tpu.dimension_semantics<arbitrary>], iteration_bounds = array<i64: 2, 4>, scalar_prefetch = 0 : i64, scratch_operands = 2 : i64, tpu.core_type = #tpu.core_type<tc>, window_params = [{transform_indices = @transform_0, window_bounds = array<i64: 1, 65, 32>}, {pipeline_mode = #tpu.pipeline_mode<synchronous>, transform_indices = @transform_1, window_bounds = array<i64: 1, 32>}, {pipeline_mode = #tpu.pipeline_mode<synchronous>, transform_indices = @transform_2, window_bounds = array<i64: 1, 32>}, {transform_indices = @transform_3, window_bounds = array<i64: 1, 32, 8>}, {transform_indices = @transform_4, window_bounds = array<i64: 1, 32, 8>}, {transform_indices = @transform_5, window_bounds = array<i64: 1, 32, 8>}, {transform_indices = @transform_6, window_bounds = array<i64: 1, 8, 32>}, {pipeline_mode = #tpu.pipeline_mode<synchronous>, transform_indices = @transform_7, window_bounds = array<i64: 1, 32>}, {transform_indices = @transform_8, window_bounds = array<i64: 1, 65, 32>}]} {
    %c0 = arith.constant 0 : index
    %c0_0 = arith.constant 0 : index
    %c0_1 = arith.constant 0 : index
    %0 = vector.load %arg2[%c0, %c0_0, %c0_1] : memref<1x65x32xf32, #tpu.memory_space<vmem>>, vector<1x65x32xf32>
    %1 = vector.shape_cast %0 : vector<1x65x32xf32> to vector<65x32xf32>
    %c0_i32 = arith.constant 0 : i32
    %2 = arith.cmpi eq, %arg1, %c0_i32 : i32
    %3 = arith.extui %2 : i1 to i32
    %c0_i32_2 = arith.constant 0 : i32
    %4 = arith.cmpi ne, %3, %c0_i32_2 : i32
    scf.if %4 {
      %c0_30 = arith.constant 0 : index
      %c0_31 = arith.constant 0 : index
      %44 = vector.load %arg3[%c0_30, %c0_31] : memref<1x32xf32, #tpu.memory_space<vmem>>, vector<1x32xf32>
      %c0_32 = arith.constant 0 : index
      %c0_33 = arith.constant 0 : index
      %45 = vector.load %arg4[%c0_32, %c0_33] : memref<1x32xf32, #tpu.memory_space<vmem>>, vector<1x32xf32>
      %cst_34 = arith.constant dense<0.000000e+00> : vector<65xf32>
      %46 = vector.multi_reduction <add>, %1, %cst_34 [1] : vector<65x32xf32> to vector<65xf32>
      %47 = vector.shape_cast %46 : vector<65xf32> to vector<65x1xf32>
      %cst_35 = arith.constant 3.200000e+01 : f32
      %48 = vector.broadcast %cst_35 : f32 to vector<65x1xf32>
      %49 = arith.divf %47, %48 : vector<65x1xf32>
      %50 = vector.broadcast %49 : vector<65x1xf32> to vector<65x32xf32>
      %51 = arith.subf %1, %50 : vector<65x32xf32>
      %52 = arith.mulf %51, %51 : vector<65x32xf32>
      %cst_36 = arith.constant dense<0.000000e+00> : vector<65xf32>
      %53 = vector.multi_reduction <add>, %52, %cst_36 [1] : vector<65x32xf32> to vector<65xf32>
      %54 = vector.shape_cast %53 : vector<65xf32> to vector<65x1xf32>
      %cst_37 = arith.constant 3.200000e+01 : f32
      %55 = vector.broadcast %cst_37 : f32 to vector<65x1xf32>
      %56 = arith.divf %54, %55 : vector<65x1xf32>
      %57 = vector.broadcast %49 : vector<65x1xf32> to vector<65x32xf32>
      %58 = arith.subf %1, %57 : vector<65x32xf32>
      %cst_38 = arith.constant 9.99999974E-6 : f32
      %59 = vector.broadcast %cst_38 : f32 to vector<65x1xf32>
      %60 = arith.addf %56, %59 : vector<65x1xf32>
      %61 = math.rsqrt %60 : vector<65x1xf32>
      %62 = vector.broadcast %61 : vector<65x1xf32> to vector<65x32xf32>
      %63 = arith.mulf %58, %62 : vector<65x32xf32>
      %64 = vector.broadcast %44 : vector<1x32xf32> to vector<65x32xf32>
      %65 = arith.mulf %63, %64 : vector<65x32xf32>
      %66 = vector.broadcast %45 : vector<1x32xf32> to vector<65x32xf32>
      %67 = arith.addf %65, %66 : vector<65x32xf32>
      %c0_39 = arith.constant 0 : index
      %c0_40 = arith.constant 0 : index
      %68 = vector.load %arg11[%c0_39, %c0_40] : memref<65x32xf32, #tpu.memory_space<vmem>>, vector<65x32xf32>
      tpu.vector_store %arg11[%c0_39, %c0_40], %67 {strides = array<i32>} : memref<65x32xf32, #tpu.memory_space<vmem>>, vector<65x32xf32>,
      %cst_41 = arith.constant 0.000000e+00 : f32
      %69 = vector.broadcast %cst_41 : f32 to vector<65x32xf32>
      %c0_42 = arith.constant 0 : index
      %c0_43 = arith.constant 0 : index
      %70 = vector.load %arg12[%c0_42, %c0_43] : memref<65x32xf32, #tpu.memory_space<vmem>>, vector<65x32xf32>
      tpu.vector_store %arg12[%c0_42, %c0_43], %69 {strides = array<i32>} : memref<65x32xf32, #tpu.memory_space<vmem>>, vector<65x32xf32>,
    } else {
    }
    %c0_3 = arith.constant 0 : index
    %c0_4 = arith.constant 0 : index
    %5 = vector.load %arg11[%c0_3, %c0_4] : memref<65x32xf32, #tpu.memory_space<vmem>>, vector<65x32xf32>
    %6 = arith.truncf %5 : vector<65x32xf32> to vector<65x32xbf16>
    %c0_5 = arith.constant 0 : index
    %c0_6 = arith.constant 0 : index
    %c0_7 = arith.constant 0 : index
    %7 = vector.load %arg5[%c0_5, %c0_6, %c0_7] : memref<1x32x8xbf16, #tpu.memory_space<vmem>>, vector<1x32x8xbf16>
    %8 = vector.shape_cast %7 : vector<1x32x8xbf16> to vector<32x8xbf16>
    %cst = arith.constant dense<0.000000e+00> : vector<65x8xf32>
    %9 = tpu.matmul %6, %8, %cst {dimension_numbers = #tpu.dot_dimension_numbers<[1], [0], [0], [1], [0, 0, 1, 1], [], []>} : vector<65x32xbf16>, vector<32x8xbf16>, vector<65x8xf32> -> vector<65x8xf32>
    %c0_8 = arith.constant 0 : index
    %c0_9 = arith.constant 0 : index
    %c0_10 = arith.constant 0 : index
    %10 = vector.load %arg6[%c0_8, %c0_9, %c0_10] : memref<1x32x8xbf16, #tpu.memory_space<vmem>>, vector<1x32x8xbf16>
    %11 = vector.shape_cast %10 : vector<1x32x8xbf16> to vector<32x8xbf16>
    %cst_11 = arith.constant dense<0.000000e+00> : vector<65x8xf32>
    %12 = tpu.matmul %6, %11, %cst_11 {dimension_numbers = #tpu.dot_dimension_numbers<[1], [0], [0], [1], [0, 0, 1, 1], [], []>} : vector<65x32xbf16>, vector<32x8xbf16>, vector<65x8xf32> -> vector<65x8xf32>
    %c0_12 = arith.constant 0 : index
    %c0_13 = arith.constant 0 : index
    %c0_14 = arith.constant 0 : index
    %13 = vector.load %arg7[%c0_12, %c0_13, %c0_14] : memref<1x32x8xbf16, #tpu.memory_space<vmem>>, vector<1x32x8xbf16>
    %14 = vector.shape_cast %13 : vector<1x32x8xbf16> to vector<32x8xbf16>
    %cst_15 = arith.constant dense<0.000000e+00> : vector<65x8xf32>
    %15 = tpu.matmul %6, %14, %cst_15 {dimension_numbers = #tpu.dot_dimension_numbers<[1], [0], [0], [1], [0, 0, 1, 1], [], []>} : vector<65x32xbf16>, vector<32x8xbf16>, vector<65x8xf32> -> vector<65x8xf32>
    %16 = arith.truncf %9 : vector<65x8xf32> to vector<65x8xbf16>
    %17 = arith.truncf %12 : vector<65x8xf32> to vector<65x8xbf16>
    %cst_16 = arith.constant dense<0.000000e+00> : vector<65x65xf32>
    %18 = tpu.matmul %16, %17, %cst_16 {dimension_numbers = #tpu.dot_dimension_numbers<[1], [1], [0], [0], [0, 0, 1, 0], [], []>} : vector<65x8xbf16>, vector<65x8xbf16>, vector<65x65xf32> -> vector<65x65xf32>
    %cst_17 = arith.constant 0.353553385 : f32
    %19 = vector.broadcast %cst_17 : f32 to vector<65x65xf32>
    %20 = arith.mulf %18, %19 : vector<65x65xf32>
    %cst_18 = arith.constant dense<0xFF800000> : vector<65xf32>
    %21 = vector.multi_reduction <maximumf>, %20, %cst_18 [1] : vector<65x65xf32> to vector<65xf32>
    %22 = vector.shape_cast %21 : vector<65xf32> to vector<65x1xf32>
    %23 = vector.broadcast %22 : vector<65x1xf32> to vector<65x65xf32>
    %24 = arith.subf %20, %23 : vector<65x65xf32>
    %25 = math.exp %24 : vector<65x65xf32>
    %cst_19 = arith.constant dense<0.000000e+00> : vector<65xf32>
    %26 = vector.multi_reduction <add>, %25, %cst_19 [1] : vector<65x65xf32> to vector<65xf32>
    %27 = vector.shape_cast %26 : vector<65xf32> to vector<65x1xf32>
    %28 = tpu.reciprocal %27 {approx = true} : vector<65x1xf32> -> vector<65x1xf32>
    %29 = vector.broadcast %28 : vector<65x1xf32> to vector<65x65xf32>
    %30 = arith.mulf %25, %29 : vector<65x65xf32>
    %31 = arith.truncf %30 : vector<65x65xf32> to vector<65x65xbf16>
    %32 = arith.truncf %15 : vector<65x8xf32> to vector<65x8xbf16>
    %cst_20 = arith.constant dense<0.000000e+00> : vector<65x8xf32>
    %33 = tpu.matmul %31, %32, %cst_20 {dimension_numbers = #tpu.dot_dimension_numbers<[1], [0], [0], [1], [0, 0, 1, 1], [], []>} : vector<65x65xbf16>, vector<65x8xbf16>, vector<65x8xf32> -> vector<65x8xf32>
    %c0_21 = arith.constant 0 : index
    %c0_22 = arith.constant 0 : index
    %34 = vector.load %arg12[%c0_21, %c0_22] : memref<65x32xf32, #tpu.memory_space<vmem>>, vector<65x32xf32>
    %35 = arith.truncf %33 : vector<65x8xf32> to vector<65x8xbf16>
    %c0_23 = arith.constant 0 : index
    %c0_24 = arith.constant 0 : index
    %c0_25 = arith.constant 0 : index
    %36 = vector.load %arg8[%c0_23, %c0_24, %c0_25] : memref<1x8x32xbf16, #tpu.memory_space<vmem>>, vector<1x8x32xbf16>
    %37 = vector.shape_cast %36 : vector<1x8x32xbf16> to vector<8x32xbf16>
    %cst_26 = arith.constant dense<0.000000e+00> : vector<65x32xf32>
    %38 = tpu.matmul %35, %37, %cst_26 {dimension_numbers = #tpu.dot_dimension_numbers<[1], [0], [0], [1], [0, 0, 1, 1], [], []>} : vector<65x8xbf16>, vector<8x32xbf16>, vector<65x32xf32> -> vector<65x32xf32>
    %39 = arith.addf %34, %38 : vector<65x32xf32>
    %c0_27 = arith.constant 0 : index
    %c0_28 = arith.constant 0 : index
    %40 = vector.load %arg12[%c0_27, %c0_28] : memref<65x32xf32, #tpu.memory_space<vmem>>, vector<65x32xf32>
    tpu.vector_store %arg12[%c0_27, %c0_28], %39 {strides = array<i32>} : memref<65x32xf32, #tpu.memory_space<vmem>>, vector<65x32xf32>,
    %c3_i32 = arith.constant 3 : i32
    %41 = arith.cmpi eq, %arg1, %c3_i32 : i32
    %42 = arith.extui %41 : i1 to i32
    %c0_i32_29 = arith.constant 0 : i32
    %43 = arith.cmpi ne, %42, %c0_i32_29 : i32
    scf.if %43 {
      %c0_30 = arith.constant 0 : index
      %c0_31 = arith.constant 0 : index
      %44 = vector.load %arg12[%c0_30, %c0_31] : memref<65x32xf32, #tpu.memory_space<vmem>>, vector<65x32xf32>
      %45 = arith.addf %1, %44 : vector<65x32xf32>
      %c0_32 = arith.constant 0 : index
      %c0_33 = arith.constant 0 : index
      %46 = vector.load %arg9[%c0_32, %c0_33] : memref<1x32xf32, #tpu.memory_space<vmem>>, vector<1x32xf32>
      %47 = vector.broadcast %46 : vector<1x32xf32> to vector<65x32xf32>
      %48 = arith.addf %45, %47 : vector<65x32xf32>
      %c0_34 = arith.constant 0 : index
      %c0_35 = arith.constant 0 : index
      %c0_36 = arith.constant 0 : index
      %49 = vector.load %arg10[%c0_34, %c0_35, %c0_36] : memref<1x65x32xf32, #tpu.memory_space<vmem>>, vector<1x65x32xf32>
      %50 = vector.shape_cast %49 : vector<1x65x32xf32> to vector<65x32xf32>
      %51 = vector.shape_cast %48 : vector<65x32xf32> to vector<1x65x32xf32>
      tpu.vector_store %arg10[%c0_34, %c0_35, %c0_36], %51 {strides = array<i32>} : memref<1x65x32xf32, #tpu.memory_space<vmem>>, vector<1x65x32xf32>,
    } else {
    }
    return
  }
  func.func @transform_0(%arg0: i32, %arg1: i32) -> (i32, i32, i32) {
    %c0_i32 = arith.constant 0 : i32
    %c0_i32_0 = arith.constant 0 : i32
    %c0_i32_1 = arith.constant 0 : i32
    return %arg0, %c0_i32, %c0_i32_0 : i32, i32, i32
  }
  func.func @transform_1(%arg0: i32, %arg1: i32) -> (i32, i32) {
    %c0_i32 = arith.constant 0 : i32
    %c0_i32_0 = arith.constant 0 : i32
    %c0_i32_1 = arith.constant 0 : i32
    return %c0_i32, %c0_i32_0 : i32, i32
  }
  func.func @transform_2(%arg0: i32, %arg1: i32) -> (i32, i32) {
    %c0_i32 = arith.constant 0 : i32
    %c0_i32_0 = arith.constant 0 : i32
    %c0_i32_1 = arith.constant 0 : i32
    return %c0_i32, %c0_i32_0 : i32, i32
  }
  func.func @transform_3(%arg0: i32, %arg1: i32) -> (i32, i32, i32) {
    %c0_i32 = arith.constant 0 : i32
    %c0_i32_0 = arith.constant 0 : i32
    %c0_i32_1 = arith.constant 0 : i32
    return %arg1, %c0_i32, %c0_i32_0 : i32, i32, i32
  }
  func.func @transform_4(%arg0: i32, %arg1: i32) -> (i32, i32, i32) {
    %c0_i32 = arith.constant 0 : i32
    %c0_i32_0 = arith.constant 0 : i32
    %c0_i32_1 = arith.constant 0 : i32
    return %arg1, %c0_i32, %c0_i32_0 : i32, i32, i32
  }
  func.func @transform_5(%arg0: i32, %arg1: i32) -> (i32, i32, i32) {
    %c0_i32 = arith.constant 0 : i32
    %c0_i32_0 = arith.constant 0 : i32
    %c0_i32_1 = arith.constant 0 : i32
    return %arg1, %c0_i32, %c0_i32_0 : i32, i32, i32
  }
  func.func @transform_6(%arg0: i32, %arg1: i32) -> (i32, i32, i32) {
    %c0_i32 = arith.constant 0 : i32
    %c0_i32_0 = arith.constant 0 : i32
    %c0_i32_1 = arith.constant 0 : i32
    return %arg1, %c0_i32, %c0_i32_0 : i32, i32, i32
  }
  func.func @transform_7(%arg0: i32, %arg1: i32) -> (i32, i32) {
    %c0_i32 = arith.constant 0 : i32
    %c0_i32_0 = arith.constant 0 : i32
    %c0_i32_1 = arith.constant 0 : i32
    return %c0_i32, %c0_i32_0 : i32, i32
  }
  func.func @transform_8(%arg0: i32, %arg1: i32) -> (i32, i32, i32) {
    %c0_i32 = arith.constant 0 : i32
    %c0_i32_0 = arith.constant 0 : i32
    %c0_i32_1 = arith.constant 0 : i32
    return %arg0, %c0_i32, %c0_i32_0 : i32, i32, i32
  }
}

module attributes {stable_mosaic.version = 11 : i64} {
  func.func @_ffn_kernel(%arg0: i32, %arg1: memref<136x32xf32, #tpu.memory_space<vmem>>, %arg2: memref<1x32xf32, #tpu.memory_space<vmem>>, %arg3: memref<1x32xf32, #tpu.memory_space<vmem>>, %arg4: memref<32x64xbf16, #tpu.memory_space<vmem>>, %arg5: memref<1x64xf32, #tpu.memory_space<vmem>>, %arg6: memref<64x32xbf16, #tpu.memory_space<vmem>>, %arg7: memref<1x32xf32, #tpu.memory_space<vmem>>, %arg8: memref<136x32xf32, #tpu.memory_space<vmem>>) attributes {dimension_semantics = [#tpu.dimension_semantics<parallel>], iteration_bounds = array<i64: 1>, scalar_prefetch = 0 : i64, scratch_operands = 0 : i64, tpu.core_type = #tpu.core_type<tc>, window_params = [{transform_indices = @transform_0, window_bounds = array<i64: 136, 32>}, {pipeline_mode = #tpu.pipeline_mode<synchronous>, transform_indices = @transform_1, window_bounds = array<i64: 1, 32>}, {pipeline_mode = #tpu.pipeline_mode<synchronous>, transform_indices = @transform_2, window_bounds = array<i64: 1, 32>}, {pipeline_mode = #tpu.pipeline_mode<synchronous>, transform_indices = @transform_3, window_bounds = array<i64: 32, 64>}, {pipeline_mode = #tpu.pipeline_mode<synchronous>, transform_indices = @transform_4, window_bounds = array<i64: 1, 64>}, {pipeline_mode = #tpu.pipeline_mode<synchronous>, transform_indices = @transform_5, window_bounds = array<i64: 64, 32>}, {pipeline_mode = #tpu.pipeline_mode<synchronous>, transform_indices = @transform_6, window_bounds = array<i64: 1, 32>}, {transform_indices = @transform_7, window_bounds = array<i64: 136, 32>}]} {
    %c0 = arith.constant 0 : index
    %c0_0 = arith.constant 0 : index
    %0 = vector.load %arg1[%c0, %c0_0] : memref<136x32xf32, #tpu.memory_space<vmem>>, vector<136x32xf32>
    %c0_1 = arith.constant 0 : index
    %c0_2 = arith.constant 0 : index
    %1 = vector.load %arg2[%c0_1, %c0_2] : memref<1x32xf32, #tpu.memory_space<vmem>>, vector<1x32xf32>
    %c0_3 = arith.constant 0 : index
    %c0_4 = arith.constant 0 : index
    %2 = vector.load %arg3[%c0_3, %c0_4] : memref<1x32xf32, #tpu.memory_space<vmem>>, vector<1x32xf32>
    %cst = arith.constant dense<0.000000e+00> : vector<136xf32>
    %3 = vector.multi_reduction <add>, %0, %cst [1] : vector<136x32xf32> to vector<136xf32>
    %4 = vector.shape_cast %3 : vector<136xf32> to vector<136x1xf32>
    %cst_5 = arith.constant 3.200000e+01 : f32
    %5 = vector.broadcast %cst_5 : f32 to vector<136x1xf32>
    %6 = arith.divf %4, %5 : vector<136x1xf32>
    %7 = vector.broadcast %6 : vector<136x1xf32> to vector<136x32xf32>
    %8 = arith.subf %0, %7 : vector<136x32xf32>
    %9 = arith.mulf %8, %8 : vector<136x32xf32>
    %cst_6 = arith.constant dense<0.000000e+00> : vector<136xf32>
    %10 = vector.multi_reduction <add>, %9, %cst_6 [1] : vector<136x32xf32> to vector<136xf32>
    %11 = vector.shape_cast %10 : vector<136xf32> to vector<136x1xf32>
    %cst_7 = arith.constant 3.200000e+01 : f32
    %12 = vector.broadcast %cst_7 : f32 to vector<136x1xf32>
    %13 = arith.divf %11, %12 : vector<136x1xf32>
    %14 = vector.broadcast %6 : vector<136x1xf32> to vector<136x32xf32>
    %15 = arith.subf %0, %14 : vector<136x32xf32>
    %cst_8 = arith.constant 9.99999974E-6 : f32
    %16 = vector.broadcast %cst_8 : f32 to vector<136x1xf32>
    %17 = arith.addf %13, %16 : vector<136x1xf32>
    %18 = math.rsqrt %17 : vector<136x1xf32>
    %19 = vector.broadcast %18 : vector<136x1xf32> to vector<136x32xf32>
    %20 = arith.mulf %15, %19 : vector<136x32xf32>
    %21 = vector.broadcast %1 : vector<1x32xf32> to vector<136x32xf32>
    %22 = arith.mulf %20, %21 : vector<136x32xf32>
    %23 = vector.broadcast %2 : vector<1x32xf32> to vector<136x32xf32>
    %24 = arith.addf %22, %23 : vector<136x32xf32>
    %25 = arith.truncf %24 : vector<136x32xf32> to vector<136x32xbf16>
    %c0_9 = arith.constant 0 : index
    %c0_10 = arith.constant 0 : index
    %26 = vector.load %arg4[%c0_9, %c0_10] : memref<32x64xbf16, #tpu.memory_space<vmem>>, vector<32x64xbf16>
    %cst_11 = arith.constant dense<0.000000e+00> : vector<136x64xf32>
    %27 = tpu.matmul %25, %26, %cst_11 {dimension_numbers = #tpu.dot_dimension_numbers<[1], [0], [0], [1], [0, 0, 1, 1], [], []>} : vector<136x32xbf16>, vector<32x64xbf16>, vector<136x64xf32> -> vector<136x64xf32>
    %c0_12 = arith.constant 0 : index
    %c0_13 = arith.constant 0 : index
    %28 = vector.load %arg5[%c0_12, %c0_13] : memref<1x64xf32, #tpu.memory_space<vmem>>, vector<1x64xf32>
    %29 = vector.broadcast %28 : vector<1x64xf32> to vector<136x64xf32>
    %30 = arith.addf %27, %29 : vector<136x64xf32>
    %cst_14 = arith.constant 5.000000e-01 : f32
    %31 = vector.broadcast %cst_14 : f32 to vector<136x64xf32>
    %32 = arith.mulf %31, %30 : vector<136x64xf32>
    %cst_15 = arith.constant 0.707106769 : f32
    %33 = vector.broadcast %cst_15 : f32 to vector<136x64xf32>
    %34 = arith.mulf %30, %33 : vector<136x64xf32>
    %35 = math.erf %34 : vector<136x64xf32>
    %cst_16 = arith.constant 1.000000e+00 : f32
    %36 = vector.broadcast %cst_16 : f32 to vector<136x64xf32>
    %37 = arith.addf %36, %35 : vector<136x64xf32>
    %38 = arith.mulf %32, %37 : vector<136x64xf32>
    %39 = arith.truncf %38 : vector<136x64xf32> to vector<136x64xbf16>
    %c0_17 = arith.constant 0 : index
    %c0_18 = arith.constant 0 : index
    %40 = vector.load %arg6[%c0_17, %c0_18] : memref<64x32xbf16, #tpu.memory_space<vmem>>, vector<64x32xbf16>
    %cst_19 = arith.constant dense<0.000000e+00> : vector<136x32xf32>
    %41 = tpu.matmul %39, %40, %cst_19 {dimension_numbers = #tpu.dot_dimension_numbers<[1], [0], [0], [1], [0, 0, 1, 1], [], []>} : vector<136x64xbf16>, vector<64x32xbf16>, vector<136x32xf32> -> vector<136x32xf32>
    %c0_20 = arith.constant 0 : index
    %c0_21 = arith.constant 0 : index
    %42 = vector.load %arg7[%c0_20, %c0_21] : memref<1x32xf32, #tpu.memory_space<vmem>>, vector<1x32xf32>
    %43 = vector.broadcast %42 : vector<1x32xf32> to vector<136x32xf32>
    %44 = arith.addf %41, %43 : vector<136x32xf32>
    %45 = arith.addf %0, %44 : vector<136x32xf32>
    %c0_22 = arith.constant 0 : index
    %c0_23 = arith.constant 0 : index
    %46 = vector.load %arg8[%c0_22, %c0_23] : memref<136x32xf32, #tpu.memory_space<vmem>>, vector<136x32xf32>
    tpu.vector_store %arg8[%c0_22, %c0_23], %45 {strides = array<i32>} : memref<136x32xf32, #tpu.memory_space<vmem>>, vector<136x32xf32>,
    return
  }
  func.func @transform_0(%arg0: i32) -> (i32, i32) {
    %c0_i32 = arith.constant 0 : i32
    %c0_i32_0 = arith.constant 0 : i32
    return %arg0, %c0_i32 : i32, i32
  }
  func.func @transform_1(%arg0: i32) -> (i32, i32) {
    %c0_i32 = arith.constant 0 : i32
    %c0_i32_0 = arith.constant 0 : i32
    %c0_i32_1 = arith.constant 0 : i32
    return %c0_i32, %c0_i32_0 : i32, i32
  }
  func.func @transform_2(%arg0: i32) -> (i32, i32) {
    %c0_i32 = arith.constant 0 : i32
    %c0_i32_0 = arith.constant 0 : i32
    %c0_i32_1 = arith.constant 0 : i32
    return %c0_i32, %c0_i32_0 : i32, i32
  }
  func.func @transform_3(%arg0: i32) -> (i32, i32) {
    %c0_i32 = arith.constant 0 : i32
    %c0_i32_0 = arith.constant 0 : i32
    %c0_i32_1 = arith.constant 0 : i32
    return %c0_i32, %c0_i32_0 : i32, i32
  }
  func.func @transform_4(%arg0: i32) -> (i32, i32) {
    %c0_i32 = arith.constant 0 : i32
    %c0_i32_0 = arith.constant 0 : i32
    %c0_i32_1 = arith.constant 0 : i32
    return %c0_i32, %c0_i32_0 : i32, i32
  }
  func.func @transform_5(%arg0: i32) -> (i32, i32) {
    %c0_i32 = arith.constant 0 : i32
    %c0_i32_0 = arith.constant 0 : i32
    %c0_i32_1 = arith.constant 0 : i32
    return %c0_i32, %c0_i32_0 : i32, i32
  }
  func.func @transform_6(%arg0: i32) -> (i32, i32) {
    %c0_i32 = arith.constant 0 : i32
    %c0_i32_0 = arith.constant 0 : i32
    %c0_i32_1 = arith.constant 0 : i32
    return %c0_i32, %c0_i32_0 : i32, i32
  }
  func.func @transform_7(%arg0: i32) -> (i32, i32) {
    %c0_i32 = arith.constant 0 : i32
    %c0_i32_0 = arith.constant 0 : i32
    return %arg0, %c0_i32 : i32, i32
  }
}

module attributes {stable_mosaic.version = 11 : i64} {
  func.func @_head_kernel(%arg0: i32, %arg1: memref<2x32xf32, #tpu.memory_space<vmem>>, %arg2: memref<1x32xf32, #tpu.memory_space<vmem>>, %arg3: memref<1x32xf32, #tpu.memory_space<vmem>>, %arg4: memref<32x128xbf16, #tpu.memory_space<vmem>>, %arg5: memref<1x128xf32, #tpu.memory_space<vmem>>, %arg6: memref<2x128xf32, #tpu.memory_space<vmem>>) attributes {dimension_semantics = [#tpu.dimension_semantics<arbitrary>], iteration_bounds = array<i64: 1>, scalar_prefetch = 0 : i64, scratch_operands = 0 : i64, tpu.core_type = #tpu.core_type<tc>, window_params = [{pipeline_mode = #tpu.pipeline_mode<synchronous>, transform_indices = @transform_0, window_bounds = array<i64: 2, 32>}, {pipeline_mode = #tpu.pipeline_mode<synchronous>, transform_indices = @transform_1, window_bounds = array<i64: 1, 32>}, {pipeline_mode = #tpu.pipeline_mode<synchronous>, transform_indices = @transform_2, window_bounds = array<i64: 1, 32>}, {pipeline_mode = #tpu.pipeline_mode<synchronous>, transform_indices = @transform_3, window_bounds = array<i64: 32, 128>}, {pipeline_mode = #tpu.pipeline_mode<synchronous>, transform_indices = @transform_4, window_bounds = array<i64: 1, 128>}, {pipeline_mode = #tpu.pipeline_mode<synchronous>, transform_indices = @transform_5, window_bounds = array<i64: 2, 128>}]} {
    %c0 = arith.constant 0 : index
    %c0_0 = arith.constant 0 : index
    %0 = vector.load %arg1[%c0, %c0_0] : memref<2x32xf32, #tpu.memory_space<vmem>>, vector<2x32xf32>
    %c0_1 = arith.constant 0 : index
    %c0_2 = arith.constant 0 : index
    %1 = vector.load %arg2[%c0_1, %c0_2] : memref<1x32xf32, #tpu.memory_space<vmem>>, vector<1x32xf32>
    %c0_3 = arith.constant 0 : index
    %c0_4 = arith.constant 0 : index
    %2 = vector.load %arg3[%c0_3, %c0_4] : memref<1x32xf32, #tpu.memory_space<vmem>>, vector<1x32xf32>
    %cst = arith.constant dense<0.000000e+00> : vector<2xf32>
    %3 = vector.multi_reduction <add>, %0, %cst [1] : vector<2x32xf32> to vector<2xf32>
    %4 = vector.shape_cast %3 : vector<2xf32> to vector<2x1xf32>
    %cst_5 = arith.constant 3.200000e+01 : f32
    %5 = vector.broadcast %cst_5 : f32 to vector<2x1xf32>
    %6 = arith.divf %4, %5 : vector<2x1xf32>
    %7 = vector.broadcast %6 : vector<2x1xf32> to vector<2x32xf32>
    %8 = arith.subf %0, %7 : vector<2x32xf32>
    %9 = arith.mulf %8, %8 : vector<2x32xf32>
    %cst_6 = arith.constant dense<0.000000e+00> : vector<2xf32>
    %10 = vector.multi_reduction <add>, %9, %cst_6 [1] : vector<2x32xf32> to vector<2xf32>
    %11 = vector.shape_cast %10 : vector<2xf32> to vector<2x1xf32>
    %cst_7 = arith.constant 3.200000e+01 : f32
    %12 = vector.broadcast %cst_7 : f32 to vector<2x1xf32>
    %13 = arith.divf %11, %12 : vector<2x1xf32>
    %14 = vector.broadcast %6 : vector<2x1xf32> to vector<2x32xf32>
    %15 = arith.subf %0, %14 : vector<2x32xf32>
    %cst_8 = arith.constant 9.99999974E-6 : f32
    %16 = vector.broadcast %cst_8 : f32 to vector<2x1xf32>
    %17 = arith.addf %13, %16 : vector<2x1xf32>
    %18 = math.rsqrt %17 : vector<2x1xf32>
    %19 = vector.broadcast %18 : vector<2x1xf32> to vector<2x32xf32>
    %20 = arith.mulf %15, %19 : vector<2x32xf32>
    %21 = vector.broadcast %1 : vector<1x32xf32> to vector<2x32xf32>
    %22 = arith.mulf %20, %21 : vector<2x32xf32>
    %23 = vector.broadcast %2 : vector<1x32xf32> to vector<2x32xf32>
    %24 = arith.addf %22, %23 : vector<2x32xf32>
    %25 = arith.truncf %24 : vector<2x32xf32> to vector<2x32xbf16>
    %c0_9 = arith.constant 0 : index
    %c0_10 = arith.constant 0 : index
    %26 = vector.load %arg4[%c0_9, %c0_10] : memref<32x128xbf16, #tpu.memory_space<vmem>>, vector<32x128xbf16>
    %cst_11 = arith.constant dense<0.000000e+00> : vector<2x128xf32>
    %27 = tpu.matmul %25, %26, %cst_11 {dimension_numbers = #tpu.dot_dimension_numbers<[1], [0], [0], [1], [0, 0, 1, 1], [], []>} : vector<2x32xbf16>, vector<32x128xbf16>, vector<2x128xf32> -> vector<2x128xf32>
    %c0_12 = arith.constant 0 : index
    %c0_13 = arith.constant 0 : index
    %28 = vector.load %arg5[%c0_12, %c0_13] : memref<1x128xf32, #tpu.memory_space<vmem>>, vector<1x128xf32>
    %29 = vector.broadcast %28 : vector<1x128xf32> to vector<2x128xf32>
    %30 = arith.addf %27, %29 : vector<2x128xf32>
    %c0_14 = arith.constant 0 : index
    %c0_15 = arith.constant 0 : index
    %31 = vector.load %arg6[%c0_14, %c0_15] : memref<2x128xf32, #tpu.memory_space<vmem>>, vector<2x128xf32>
    tpu.vector_store %arg6[%c0_14, %c0_15], %30 {strides = array<i32>} : memref<2x128xf32, #tpu.memory_space<vmem>>, vector<2x128xf32>,
    return
  }
  func.func @transform_0(%arg0: i32) -> (i32, i32) {
    %c0_i32 = arith.constant 0 : i32
    %c0_i32_0 = arith.constant 0 : i32
    %c0_i32_1 = arith.constant 0 : i32
    return %c0_i32, %c0_i32_0 : i32, i32
  }
  func.func @transform_1(%arg0: i32) -> (i32, i32) {
    %c0_i32 = arith.constant 0 : i32
    %c0_i32_0 = arith.constant 0 : i32
    %c0_i32_1 = arith.constant 0 : i32
    return %c0_i32, %c0_i32_0 : i32, i32
  }
  func.func @transform_2(%arg0: i32) -> (i32, i32) {
    %c0_i32 = arith.constant 0 : i32
    %c0_i32_0 = arith.constant 0 : i32
    %c0_i32_1 = arith.constant 0 : i32
    return %c0_i32, %c0_i32_0 : i32, i32
  }
  func.func @transform_3(%arg0: i32) -> (i32, i32) {
    %c0_i32 = arith.constant 0 : i32
    %c0_i32_0 = arith.constant 0 : i32
    %c0_i32_1 = arith.constant 0 : i32
    return %c0_i32, %c0_i32_0 : i32, i32
  }
  func.func @transform_4(%arg0: i32) -> (i32, i32) {
    %c0_i32 = arith.constant 0 : i32
    %c0_i32_0 = arith.constant 0 : i32
    %c0_i32_1 = arith.constant 0 : i32
    return %c0_i32, %c0_i32_0 : i32, i32
  }
  func.func @transform_5(%arg0: i32) -> (i32, i32) {
    %c0_i32 = arith.constant 0 : i32
    %c0_i32_0 = arith.constant 0 : i32
    %c0_i32_1 = arith.constant 0 : i32
    return %c0_i32, %c0_i32_0 : i32, i32
  }
}

</mosaic_0001>

<bundles_post_ra>
// kernel: vit_forward.6
= control target key start
LH: loop header
LB: loop body
LE: loop exit
PB: predicated region body
PF: predicated region fallthrough
CT: control target
= control target key end

     0   :  { %vm54_vm0 = vcmask 130048   ;;  %vm176_vm1 = vcmask 261120   ;;  %s383_s1 = inlined_call_operand.vmem [shape: bf16[16,32], index: 1, kind: input, shape index: {}]   ;;  %s384_s0 = inlined_call_operand.vmem [shape: f32[128,16], index: 0, kind: input, shape index: {}]   ;;  %s385_s2 = inlined_call_operand.vmem [shape: f32[1,32], index: 2, kind: input, shape index: {}]   ;;  %s386_s3 = inlined_call_operand.vmem [shape: f32[128,32], index: 3, kind: output, shape index: {}]  }
   0x1   :  { %v236_v0 = vld [vmem:[%s383_s1] sm:$0xff]   ;;  %v16_v2 = vld [vmem:[%s384_s0 + $0x8] sm:$0xff]  ;;  %v17_v6 = vld [vmem:[%s384_s0 + $0x10] sm:$0xff] }
   0x2   :  { %v15_v1 = vld [vmem:[%s384_s0] sm:$0xff]  ;;  %216 = vmatprep.subr.bf16.mxu0 %v236_v0  ;;  %234 = vmatprep.subr.bf16.mxu1 %v236_v0  ;;  %v24_v5 = vld [vmem:[%s384_s0 + $0x48] sm:$0xff]  ;;  %v18_v7 = vld [vmem:[%s384_s0 + $0x18] sm:$0xff] }
   0x3   :  { %v23_v3 = vld [vmem:[%s384_s0 + $0x40] sm:$0xff]  ;;  %v31_v4 = vpack.c.bf16 %v16_v2, %v15_v1  ;;  %217 = vmatpush3.bf16.msra.mxu0 %v236_v0  ;;  %235 = vmatpush3.bf16.msra.mxu1 %v236_v0  ;;  %v32_v9 = vpack.c.bf16 %v18_v7, %v17_v6  ;;  %v25_v10 = vld [vmem:[%s384_s0 + $0x50] sm:$0xff]  ;;  %v26_v11 = vld [vmem:[%s384_s0 + $0x58] sm:$0xff] }
   0x4   :  { %v35_v8 = vpack.c.bf16 %v24_v5, %v23_v3  ;;  %v19_v12 = vld [vmem:[%s384_s0 + $0x20] sm:$0xff]  ;;  %v36_v13 = vpack.c.bf16 %v26_v11, %v25_v10  ;;  %v20_v14 = vld [vmem:[%s384_s0 + $0x28] sm:$0xff]  ;;  %v21_v19 = vld [vmem:[%s384_s0 + $0x30] sm:$0xff] }
   0x5   :  { %218 = vmatprep.mubr.msk.bf16.mxu0 %vm54_vm0, %v31_v4  ;;  %v27_v15 = vld [vmem:[%s384_s0 + $0x60] sm:$0xff]  ;;  %v28_v16 = vld [vmem:[%s384_s0 + $0x68] sm:$0xff]  ;;  %v33_v17 = vpack.c.bf16 %v20_v14, %v19_v12  ;;  %v22_v20 = vld [vmem:[%s384_s0 + $0x38] sm:$0xff] }
   0x6   :  { %226 = vmatprep.mubr.msk.bf16.mxu1 %vm54_vm0, %v35_v8  ;;  %v37_v18 = vpack.c.bf16 %v28_v16, %v27_v15  ;;  %219 = vmatmul.mubr.msk.bf16.vlgmr.msra.gmra.mxu0 %vm54_vm0, %v32_v9  ;;  %v29_v21 = vld [vmem:[%s384_s0 + $0x70] sm:$0xff]  ;;  %v30_v22 = vld [vmem:[%s384_s0 + $0x78] sm:$0xff]  ;;  %v34_v23 = vpack.c.bf16 %v22_v20, %v21_v19  ;;  %v197_v25 = vld [vmem:[%s385_s2] ss:$0 sm:$0xff] }
   0x7   :  { %227 = vmatmul.mubr.msk.bf16.vlgmr.msra.gmra.mxu1 %vm54_vm0, %v36_v13  ;;  %222 = vmatprep.mubr.msk.bf16.mxu0 %vm54_vm0, %v33_v17  ;;  %v38_v24 = vpack.c.bf16 %v30_v22, %v29_v21 }
   0x8   :  { %230 = vmatprep.mubr.msk.bf16.mxu1 %vm54_vm0, %v37_v18 }
   0xe   :  { %223 = vmatmul.mubr.msk.bf16.gmra.mxu0 %vm54_vm0, %v34_v23 }
   0xf   :  { %231 = vmatmul.mubr.msk.bf16.gmra.mxu1 %vm54_vm0, %v38_v24 }
  0xc6   :  { %v220_v26 = vpop.f32.mrf.mxu0 }
  0xc7   :  { %v228_v27 = vpop.f32.mrf.mxu1  ;;  %v122_v28 = vadd.f32 %v220_v26, %v197_v25 }
  0xc8   :  { %v154_v29 = vadd.f32 %v228_v27, %v197_v25  ;;  %v113_v30 = vpop.f32.mrf.mxu0 }
  0xc9   :  { %v145_v31 = vpop.f32.mrf.mxu1  ;;  %179 = vst.msk [vmem:[%s386_s3 + $0x10] sm:$0xff] %vm176_vm1, %v122_v28  ;;  %v114_v32 = vadd.f32 %v197_v25, %v113_v30 }
  0xca   :  { %187 = vst.msk [vmem:[%s386_s3 + $0x50] sm:$0xff] %vm176_vm1, %v154_v29  ;;  %v146_v33 = vadd.f32 %v197_v25, %v145_v31  ;;  %v221_v34 = vpop.f32.mrf.mxu0 }
  0xcb   :  { %v229_v35 = vpop.f32.mrf.mxu1  ;;  %177 = vst.msk [vmem:[%s386_s3] sm:$0xff] %vm176_vm1, %v114_v32  ;;  %v125_v36 = vadd.f32 %v221_v34, %v197_v25 }
  0xcc   :  { %185 = vst.msk [vmem:[%s386_s3 + $0x40] sm:$0xff] %vm176_vm1, %v146_v33  ;;  %v157_v37 = vadd.f32 %v229_v35, %v197_v25  ;;  %v116_v38 = vpop.f32.mrf.mxu0 }
  0xcd   :  { %v148_v39 = vpop.f32.mrf.mxu1  ;;  %180 = vst.msk [vmem:[%s386_s3 + $0x18] sm:$0xff] %vm176_vm1, %v125_v36  ;;  %v117_v40 = vadd.f32 %v197_v25, %v116_v38 }
  0xce   :  { %188 = vst.msk [vmem:[%s386_s3 + $0x58] sm:$0xff] %vm176_vm1, %v157_v37  ;;  %v149_v41 = vadd.f32 %v197_v25, %v148_v39  ;;  %v224_v42 = vpop.f32.mrf.mxu0 }
  0xcf   :  { %v232_v43 = vpop.f32.mrf.mxu1  ;;  %178 = vst.msk [vmem:[%s386_s3 + $0x8] sm:$0xff] %vm176_vm1, %v117_v40  ;;  %v138_v44 = vadd.f32 %v224_v42, %v197_v25 }
  0xd0   :  { %186 = vst.msk [vmem:[%s386_s3 + $0x48] sm:$0xff] %vm176_vm1, %v149_v41  ;;  %v170_v45 = vadd.f32 %v232_v43, %v197_v25  ;;  %v129_v46 = vpop.f32.mrf.mxu0 }
  0xd1   :  { %v161_v47 = vpop.f32.mrf.mxu1  ;;  %183 = vst.msk [vmem:[%s386_s3 + $0x30] sm:$0xff] %vm176_vm1, %v138_v44  ;;  %v130_v48 = vadd.f32 %v197_v25, %v129_v46 }
  0xd2   :  { %191 = vst.msk [vmem:[%s386_s3 + $0x70] sm:$0xff] %vm176_vm1, %v170_v45  ;;  %v162_v49 = vadd.f32 %v197_v25, %v161_v47  ;;  %v225_v50 = vpop.f32.mrf.mxu0 }
  0xd3   :  { %v233_v51 = vpop.f32.mrf.mxu1  ;;  %181 = vst.msk [vmem:[%s386_s3 + $0x20] sm:$0xff] %vm176_vm1, %v130_v48  ;;  %v141_v52 = vadd.f32 %v225_v50, %v197_v25 }
  0xd4   :  { %189 = vst.msk [vmem:[%s386_s3 + $0x60] sm:$0xff] %vm176_vm1, %v162_v49  ;;  %v173_v53 = vadd.f32 %v233_v51, %v197_v25  ;;  %v132_v54 = vpop.f32.mrf.mxu0 }
  0xd5   :  { %v164_v55 = vpop.f32.mrf.mxu1  ;;  %184 = vst.msk [vmem:[%s386_s3 + $0x38] sm:$0xff] %vm176_vm1, %v141_v52  ;;  %v133_v56 = vadd.f32 %v197_v25, %v132_v54 }
  0xd6   :  { %192 = vst.msk [vmem:[%s386_s3 + $0x78] sm:$0xff] %vm176_vm1, %v173_v53  ;;  %v165_v57 = vadd.f32 %v197_v25, %v164_v55 }
  0xd7   :  { %182 = vst.msk [vmem:[%s386_s3 + $0x28] sm:$0xff] %vm176_vm1, %v133_v56 }
  0xd8   :  { %190 = vst.msk [vmem:[%s386_s3 + $0x68] sm:$0xff] %vm176_vm1, %v165_v57 }

// kernel: vit_forward.8
= control target key start
LH: loop header
LB: loop body
LE: loop exit
PB: predicated region body
PF: predicated region fallthrough
CT: control target
= control target key end

     0   :  { %vm46_vm0 = vcmask 261120   ;;  %vm1011_vm1 = vmmov 0   ;;  %vm611_vm2 = vcmask 523264   ;;  %s1559_s0 = inlined_call_operand.vmem [shape: f32[136,32], index: 0, kind: input, shape index: {}]   ;;  %s1560_s3 = inlined_call_operand.vmem [shape: bf16[32,64], index: 3, kind: input, shape index: {}]   ;;  %s1561_s1 = inlined_call_operand.vmem [shape: f32[1,32], index: 1, kind: input, shape index: {}]   ;;  %s1562_s2 = inlined_call_operand.vmem [shape: f32[1,32], index: 2, kind: input, shape index: {}]   ;;  %s1563_s5 = inlined_call_operand.vmem [shape: bf16[64,32], index: 5, kind: input, shape index: {}]   ;;  %s1564_s4 = inlined_call_operand.vmem [shape: f32[1,64], index: 4, kind: input, shape index: {}]   ;;  %s1565_s6 = inlined_call_operand.vmem [shape: f32[1,32], index: 6, kind: input, shape index: {}]   ;;  %s1566_s7 = inlined_call_operand.vmem [shape: f32[136,32], index: 7, kind: output, shape index: {}]  }
   0x1   :  { %v27_v0 = vld [vmem:[%s1559_s0] sm:$0xff]  ;;  %v29_v1 = vld [vmem:[%s1559_s0 + $0x10] sm:$0xff]  ;;  %v28_v2 = vld [vmem:[%s1559_s0 + $0x8] sm:$0xff] }
   0x2   :  { %v47_v3 = vsel %vm46_vm0, %v27_v0, 0.0  ;;  %v53_v4 = vsel %vm46_vm0, %v29_v1, 0.0  ;;  %v30_v5 = vld [vmem:[%s1559_s0 + $0x18] sm:$0xff]  ;;  %v50_v6 = vsel %vm46_vm0, %v28_v2, 0.0  ;;  %v1071_v8 = vld [vmem:[%s1559_s0 + $0x20] sm:$0xff]  ;;  %v1076_v9 = vld [vmem:[%s1559_s0 + $0x28] sm:$0xff] }
   0x3   :  { %48 = vadd.xlane.f32.xlu0 %v47_v3  ;;  %54 = vadd.xlane.f32.xlu1 %v53_v4  ;;  %v56_v7 = vsel %vm46_vm0, %v30_v5, 0.0  ;;  %v59_v10 = vsel %vm46_vm0, %v1071_v8, 0.0  ;;  %v62_v11 = vsel %vm46_vm0, %v1076_v9, 0.0  ;;  %v1085_v12 = vld [vmem:[%s1559_s0 + $0x30] sm:$0xff]  ;;  %v1090_v13 = vld [vmem:[%s1559_s0 + $0x38] sm:$0xff]  ;;  %v1099_v16 = vld [vmem:[%s1559_s0 + $0x40] sm:$0xff] }
   0x4   :  { %v65_v14 = vsel %vm46_vm0, %v1085_v12, 0.0  ;;  %v68_v15 = vsel %vm46_vm0, %v1090_v13, 0.0  ;;  %v1104_v17 = vld [vmem:[%s1559_s0 + $0x48] sm:$0xff]  ;;  %v71_v18 = vsel %vm46_vm0, %v1099_v16, 0.0  ;;  %v1113_v20 = vld [vmem:[%s1559_s0 + $0x50] sm:$0xff]  ;;  %v1118_v21 = vld [vmem:[%s1559_s0 + $0x58] sm:$0xff] }
   0x5   :  { %v74_v19 = vsel %vm46_vm0, %v1104_v17, 0.0  ;;  %v77_v22 = vsel %vm46_vm0, %v1113_v20, 0.0  ;;  %v80_v23 = vsel %vm46_vm0, %v1118_v21, 0.0  ;;  %v1127_v24 = vld [vmem:[%s1559_s0 + $0x60] sm:$0xff]  ;;  %v1132_v25 = vld [vmem:[%s1559_s0 + $0x68] sm:$0xff]  ;;  %v1141_v28 = vld [vmem:[%s1559_s0 + $0x70] sm:$0xff] }
   0x6   :  { %v83_v26 = vsel %vm46_vm0, %v1127_v24, 0.0  ;;  %v86_v27 = vsel %vm46_vm0, %v1132_v25, 0.0  ;;  %v1146_v29 = vld [vmem:[%s1559_s0 + $0x78] sm:$0xff]  ;;  %v89_v30 = vsel %vm46_vm0, %v1141_v28, 0.0  ;;  %v1155_v32 = vld [vmem:[%s1559_s0 + $0x80] sm:$0xff] }
   0x7   :  { %51 = vadd.xlane.f32.xlu0 %v50_v6  ;;  %57 = vadd.xlane.f32.xlu1 %v56_v7  ;;  %v92_v31 = vsel %vm46_vm0, %v1146_v29, 0.0  ;;  %v95_v33 = vsel %vm46_vm0, %v1155_v32, 0.0 }
   0xb   :  { %60 = vadd.xlane.f32.xlu0 %v59_v10  ;;  %63 = vadd.xlane.f32.xlu1 %v62_v11 }
   0xf   :  { %66 = vadd.xlane.f32.xlu0 %v65_v14  ;;  %69 = vadd.xlane.f32.xlu1 %v68_v15 }
  0x13   :  { %72 = vadd.xlane.f32.xlu0 %v71_v18  ;;  %75 = vadd.xlane.f32.xlu1 %v74_v19 }
  0x17   :  { %78 = vadd.xlane.f32.xlu0 %v77_v22  ;;  %81 = vadd.xlane.f32.xlu1 %v80_v23 }
  0x1b   :  { %84 = vadd.xlane.f32.xlu0 %v83_v26  ;;  %87 = vadd.xlane.f32.xlu1 %v86_v27 }
  0x1f   :  { %90 = vadd.xlane.f32.xlu0 %v89_v30  ;;  %93 = vadd.xlane.f32.xlu1 %v92_v31 }
  0x23   :  { %96 = vadd.xlane.f32.xlu0 %v95_v33 }
  0x8c   :  { %v49_v34 = vpop.xlane.xlu0 %48  ;;  %v55_v35 = vpop.xlane.xlu1 %54 }
  0x8d   :  { %v99_v36 = vmul.f32 0.03125, %v49_v34  ;;  %v101_v37 = vmul.f32 0.03125, %v55_v35 }
  0x8f   :  { %v1159_v38 = vsub.f32 %v27_v0, %v99_v36  ;;  %v1161_v39 = vsub.f32 %v29_v1, %v101_v37 }
  0x90   :  { %v52_v40 = vpop.xlane.xlu0 %51  ;;  %v58_v41 = vpop.xlane.xlu1 %57 }
  0x91   :  { %v100_v42 = vmul.f32 0.03125, %v52_v40  ;;  %v102_v43 = vmul.f32 0.03125, %v58_v41  ;;  %v133_v44 = vmul.f32 %v1159_v38, %v1159_v38  ;;  %v135_v45 = vmul.f32 %v1161_v39, %v1161_v39 }
  0x93   :  { %v1167_v46 = vsub.f32 %v28_v2, %v100_v42  ;;  %v1169_v47 = vsub.f32 %v30_v5, %v102_v43  ;;  %v150_v48 = vsel %vm46_vm0, %v133_v44, 0.0  ;;  %v156_v51 = vsel %vm46_vm0, %v135_v45, 0.0 }
  0x94   :  { %151 = vadd.xlane.f32.xlu1 %v150_v48  ;;  %v61_v49 = vpop.xlane.xlu0 %60  ;;  %v64_v50 = vpop.xlane.xlu1 %63 }
  0x95   :  { %v103_v52 = vmul.f32 0.03125, %v61_v49  ;;  %v104_v53 = vmul.f32 0.03125, %v64_v50  ;;  %v134_v54 = vmul.f32 %v1167_v46, %v1167_v46  ;;  %v136_v55 = vmul.f32 %v1169_v47, %v1169_v47 }
  0x97   :  { %v1178_v56 = vsub.f32 %v1071_v8, %v103_v52  ;;  %v1181_v57 = vsub.f32 %v1076_v9, %v104_v53  ;;  %v153_v58 = vsel %vm46_vm0, %v134_v54, 0.0  ;;  %v159_v61 = vsel %vm46_vm0, %v136_v55, 0.0 }
  0x98   :  { %157 = vadd.xlane.f32.xlu1 %v156_v51  ;;  %154 = vadd.xlane.f32.xlu0 %v153_v58  ;;  %v67_v59 = vpop.xlane.xlu0 %66  ;;  %v70_v60 = vpop.xlane.xlu1 %69 }
  0x99   :  { %v105_v62 = vmul.f32 0.03125, %v67_v59  ;;  %v106_v63 = vmul.f32 0.03125, %v70_v60  ;;  %v137_v0 = vmul.f32 %v1178_v56, %v1178_v56  ;;  %v138_v1 = vmul.f32 %v1181_v57, %v1181_v57 }
  0x9b   :  { %v1190_v2 = vsub.f32 %v1085_v12, %v105_v62  ;;  %v1193_v3 = vsub.f32 %v1090_v13, %v106_v63  ;;  %v162_v4 = vsel %vm46_vm0, %v137_v0, 0.0  ;;  %v165_v7 = vsel %vm46_vm0, %v138_v1, 0.0  ;;  %v919_v62 = vld [vmem:[%s1560_s3 + $0x8] sm:$0xff]  }
  0x9c   :  { %160 = vadd.xlane.f32.xlu0 %v159_v61  ;;  %163 = vadd.xlane.f32.xlu1 %v162_v4  ;;  %v73_v5 = vpop.xlane.xlu0 %72  ;;  %v76_v6 = vpop.xlane.xlu1 %75  ;;  %v1010_v63 = vmov 0.0  }
  0x9d   :  { %v107_v8 = vmul.f32 0.03125, %v73_v5  ;;  %v108_v9 = vmul.f32 0.03125, %v76_v6  ;;  %v139_v10 = vmul.f32 %v1190_v2, %v1190_v2  ;;  %v140_v11 = vmul.f32 %v1193_v3, %v1193_v3  ;;  %833 = vmatprep.subr.bf16.mxu0 %v1010_v63  ;;  %873 = vmatprep.subr.bf16.mxu1 %v1010_v63 }
  0x9e   :  { %834 = vmatpush3.bf16.msra.mxu0 %v919_v62  ;;  %837 = vmatprep.mubr.msk.bf16.mxu0 %vm1011_vm1, %v1010_v63 }
  0x9f   :  { %v1202_v12 = vsub.f32 %v1099_v16, %v107_v8  ;;  %v1205_v13 = vsub.f32 %v1104_v17, %v108_v9  ;;  %v168_v14 = vsel %vm46_vm0, %v139_v10, 0.0  ;;  %v171_v19 = vsel %vm46_vm0, %v140_v11, 0.0  ;;  %835 = vmatprep.subr.bf16.mxu0 %v1010_v63  ;;  %881 = vmatprep.mubr.msk.bf16.mxu1 %vm1011_vm1, %v1010_v63 }
  0xa0   :  { %166 = vadd.xlane.f32.xlu0 %v165_v7  ;;  %169 = vadd.xlane.f32.xlu1 %v168_v14  ;;  %v79_v15 = vpop.xlane.xlu0 %78  ;;  %v82_v18 = vpop.xlane.xlu1 %81 }
  0xa1   :  { %v109_v22 = vmul.f32 0.03125, %v79_v15  ;;  %v110_v23 = vmul.f32 0.03125, %v82_v18  ;;  %v141_v26 = vmul.f32 %v1202_v12, %v1202_v12  ;;  %v142_v16 = vmul.f32 %v1205_v13, %v1205_v13 }
  0xa3   :  { %v1214_v27 = vsub.f32 %v1113_v20, %v109_v22  ;;  %v1217_v17 = vsub.f32 %v1118_v21, %v110_v23  ;;  %v174_v30 = vsel %vm46_vm0, %v141_v26, 0.0  ;;  %v177_v34 = vsel %vm46_vm0, %v142_v16, 0.0 }
  0xa4   :  { %172 = vadd.xlane.f32.xlu0 %v171_v19  ;;  %175 = vadd.xlane.f32.xlu1 %v174_v30  ;;  %v85_v31 = vpop.xlane.xlu0 %84  ;;  %v88_v33 = vpop.xlane.xlu1 %87 }
  0xa5   :  { %v111_v35 = vmul.f32 0.03125, %v85_v31  ;;  %v112_v36 = vmul.f32 0.03125, %v88_v33  ;;  %v143_v37 = vmul.f32 %v1214_v27, %v1214_v27  ;;  %v144_v20 = vmul.f32 %v1217_v17, %v1217_v17 }
  0xa7   :  { %v1226_v40 = vsub.f32 %v1127_v24, %v111_v35  ;;  %v1229_v21 = vsub.f32 %v1132_v25, %v112_v36  ;;  %v180_v41 = vsel %vm46_vm0, %v143_v37, 0.0  ;;  %v183_v44 = vsel %vm46_vm0, %v144_v20, 0.0 }
  0xa8   :  { %178 = vadd.xlane.f32.xlu0 %v177_v34  ;;  %181 = vadd.xlane.f32.xlu1 %v180_v41  ;;  %v91_v42 = vpop.xlane.xlu0 %90  ;;  %v94_v43 = vpop.xlane.xlu1 %93  ;;  %v1274_v41 = vld [vmem:[%s1561_s1] ss:$0 sm:$0xff] }
  0xa9   :  { %v113_v45 = vmul.f32 0.03125, %v91_v42  ;;  %v114_v48 = vmul.f32 0.03125, %v94_v43  ;;  %v145_v49 = vmul.f32 %v1226_v40, %v1226_v40  ;;  %v146_v24 = vmul.f32 %v1229_v21, %v1229_v21 }
  0xab   :  { %v1238_v50 = vsub.f32 %v1141_v28, %v113_v45  ;;  %v1241_v25 = vsub.f32 %v1146_v29, %v114_v48  ;;  %v186_v51 = vsel %vm46_vm0, %v145_v49, 0.0  ;;  %v189_v54 = vsel %vm46_vm0, %v146_v24, 0.0 }
  0xac   :  { %184 = vadd.xlane.f32.xlu0 %v183_v44  ;;  %187 = vadd.xlane.f32.xlu1 %v186_v51  ;;  %v97_v52 = vpop.xlane.xlu0 %96 }
  0xad   :  { %v115_v53 = vmul.f32 0.03125, %v97_v52  ;;  %v147_v55 = vmul.f32 %v1238_v50, %v1238_v50  ;;  %v148_v58 = vmul.f32 %v1241_v25, %v1241_v25  ;;  %v1281_v52 = vld [vmem:[%s1562_s2] ss:$0 sm:$0xff] }
  0xaf   :  { %v1250_v28 = vsub.f32 %v1155_v32, %v115_v53  ;;  %v192_v29 = vsel %vm46_vm0, %v147_v55, 0.0  ;;  %v195_v59 = vsel %vm46_vm0, %v148_v58, 0.0  ;;  %v920_v32 = vld [vmem:[%s1560_s3] sm:$0xff]  }
  0xb0   :  { %190 = vadd.xlane.f32.xlu0 %v189_v54  ;;  %193 = vadd.xlane.f32.xlu1 %v192_v29 }
  0xb1   :  { %v149_v60 = vmul.f32 %v1250_v28, %v1250_v28  ;;  %836 = vmatpush3.bf16.msra.mxu0 %v920_v32 }
  0xb3   :  { %v198_v61 = vsel %vm46_vm0, %v149_v60, 0.0 }
  0xb4   :  { %196 = vadd.xlane.f32.xlu0 %v195_v59  ;;  %199 = vadd.xlane.f32.xlu1 %v198_v61 }
 0x11d   :  { %v152_v0 = vpop.xlane.xlu1 %151 }
 0x11e   :  { %v201_v1 = vmul.f32 0.03125, %v152_v0 }
 0x120   :  { %v218_v4 = vadd.f32 1e-05, %v201_v1 }
 0x121   :  { %v158_v5 = vpop.xlane.xlu1 %157  ;;  %v155_v6 = vpop.xlane.xlu0 %154 }
 0x122   :  { %925 = vrsqrt.f32 %v218_v4  ;;  %v203_v7 = vmul.f32 0.03125, %v158_v5  ;;  %v202_v8 = vmul.f32 0.03125, %v155_v6 }
 0x124   :  { %v219_v9 = vadd.f32 1e-05, %v202_v8  ;;  %v220_v10 = vadd.f32 1e-05, %v203_v7 }
 0x125   :  { %v164_v11 = vpop.xlane.xlu1 %163  ;;  %v161_v14 = vpop.xlane.xlu0 %160 }
 0x126   :  { %v204_v15 = vmul.f32 0.03125, %v161_v14  ;;  %927 = vrsqrt.f32 %v219_v9  ;;  %v205_v19 = vmul.f32 0.03125, %v164_v11 }
 0x127   :  { %929 = vrsqrt.f32 %v220_v10 }
 0x128   :  { %v221_v18 = vadd.f32 1e-05, %v204_v15  ;;  %v222_v30 = vadd.f32 1e-05, %v205_v19 }
 0x129   :  { %v170_v22 = vpop.xlane.xlu1 %169  ;;  %v167_v23 = vpop.xlane.xlu0 %166 }
 0x12a   :  { %v206_v26 = vmul.f32 0.03125, %v167_v23  ;;  %931 = vrsqrt.f32 %v221_v18  ;;  %v207_v36 = vmul.f32 0.03125, %v170_v22 }
 0x12c   :  { %v223_v16 = vadd.f32 1e-05, %v206_v26  ;;  %v224_v44 = vadd.f32 1e-05, %v207_v36 }
 0x12d   :  { %v176_v31 = vpop.xlane.xlu1 %175  ;;  %v173_v33 = vpop.xlane.xlu0 %172 }
 0x12e   :  { %933 = vrsqrt.f32 %v223_v16  ;;  %v208_v35 = vmul.f32 0.03125, %v173_v33  ;;  %v209_v55 = vmul.f32 0.03125, %v176_v31 }
 0x12f   :  { %v926_v34 = vpop.eup %925  ;;  %935 = vrsqrt.f32 %v222_v30 }
 0x130   :  { %v252_v20 = vmul.f32 %v926_v34, %v1159_v38  ;;  %v225_v42 = vadd.f32 1e-05, %v208_v35  ;;  %v226_v4 = vadd.f32 1e-05, %v209_v55 }
 0x131   :  { %v182_v37 = vpop.xlane.xlu1 %181  ;;  %v179_v45 = vpop.xlane.xlu0 %178 }
 0x132   :  { %v275_v24 = vmul.f32 %v1274_v41, %v252_v20  ;;  %937 = vrsqrt.f32 %v225_v42  ;;  %v210_v38 = vmul.f32 0.03125, %v179_v45  ;;  %v211_v11 = vmul.f32 0.03125, %v182_v37 }
 0x133   :  { %v928_v43 = vpop.eup %927  ;;  %939 = vrsqrt.f32 %v224_v44 }
 0x134   :  { %v253_v49 = vmul.f32 %v928_v43, %v1167_v46  ;;  %v930_v51 = vpop.eup %929  ;;  %v298_v29 = vadd.f32 %v1281_v52, %v275_v24  ;;  %v227_v61 = vadd.f32 1e-05, %v210_v38  ;;  %v228_v30 = vadd.f32 1e-05, %v211_v11 }
 0x135   :  { %v188_v48 = vpop.xlane.xlu1 %187  ;;  %v254_v59 = vmul.f32 %v930_v51, %v1161_v39  ;;  %v185_v1 = vpop.xlane.xlu0 %184 }
 0x136   :  { %v276_v53 = vmul.f32 %v1274_v41, %v253_v49  ;;  %941 = vrsqrt.f32 %v227_v61  ;;  %v212_v39 = vmul.f32 0.03125, %v185_v1  ;;  %v213_v34 = vmul.f32 0.03125, %v188_v48 }
 0x137   :  { %v932_v54 = vpop.eup %931  ;;  %v277_v6 = vmul.f32 %v1274_v41, %v254_v59  ;;  %943 = vrsqrt.f32 %v226_v4 }
 0x138   :  { %v299_v46 = vadd.f32 %v1281_v52, %v276_v53  ;;  %v255_v60 = vmul.f32 %v932_v54, %v1169_v47  ;;  %v229_v18 = vadd.f32 1e-05, %v212_v39  ;;  %v230_v45 = vadd.f32 1e-05, %v213_v34 }
 0x139   :  { %v194_v58 = vpop.xlane.xlu1 %193  ;;  %v300_v14 = vadd.f32 %v1281_v52, %v277_v6  ;;  %v191_v26 = vpop.xlane.xlu0 %190 }
 0x13a   :  { %v315_v62 = vpack.c.bf16 %v299_v46, %v298_v29  ;;  %v278_v32 = vmul.f32 %v1274_v41, %v255_v60  ;;  %v214_v31 = vmul.f32 0.03125, %v191_v26  ;;  %v215_v53 = vmul.f32 0.03125, %v194_v58 }
 0x13b   :  { %v934_v0 = vpop.eup %933 }
 0x13c   :  { %838 = vmatmul.mubr.msk.bf16.vlgmr.msra.gmra.mxu0 %vm46_vm0, %v315_v62  ;;  %v936_v7 = vpop.eup %935  ;;  %v301_v47 = vadd.f32 %v1281_v52, %v278_v32  ;;  %v257_v9 = vmul.f32 %v934_v0, %v1181_v57  ;;  %v231_v37 = vadd.f32 1e-05, %v214_v31  ;;  %v232_v32 = vadd.f32 1e-05, %v215_v53  ;;  %v924_v31 = vld [vmem:[%s1563_s5] sm:$0xff]  }
 0x13d   :  { %v200_v5 = vpop.xlane.xlu1 %199  ;;  %841 = vmatprep.mubr.msk.bf16.mxu0 %vm1011_vm1, %v1010_v63  ;;  %v256_v15 = vmul.f32 %v936_v7, %v1178_v56  ;;  %v197_v44 = vpop.xlane.xlu0 %196 }
 0x13e   :  { %v217_v8 = vmul.f32 0.03125, %v200_v5  ;;  %v316_v19 = vpack.c.bf16 %v301_v47, %v300_v14  ;;  %v280_v22 = vmul.f32 %v1274_v41, %v257_v9  ;;  %v216_v48 = vmul.f32 0.03125, %v197_v44 }
 0x13f   :  { %v938_v23 = vpop.eup %937  ;;  %v279_v57 = vmul.f32 %v1274_v41, %v256_v15 }
 0x140   :  { %v234_v10 = vadd.f32 1e-05, %v217_v8  ;;  %v940_v16 = vpop.eup %939  ;;  %v303_v56 = vadd.f32 %v1281_v52, %v280_v22  ;;  %v259_v33 = vmul.f32 %v938_v23, %v1193_v3  ;;  %v233_v46 = vadd.f32 1e-05, %v216_v48 }
 0x141   :  { %v302_v35 = vadd.f32 %v1281_v52, %v279_v57  ;;  %v258_v36 = vmul.f32 %v940_v16, %v1190_v2 }
 0x142   :  { %945 = vrsqrt.f32 %v234_v10  ;;  %v282_v42 = vmul.f32 %v1274_v41, %v259_v33 }
 0x143   :  { %947 = vrsqrt.f32 %v229_v18  ;;  %v317_v20 = vpack.c.bf16 %v303_v56, %v302_v35  ;;  %v942_v43 = vpop.eup %941  ;;  %v281_v49 = vmul.f32 %v1274_v41, %v258_v36  ;;  %v1374_v56 = vld [vmem:[%s1564_s4] ss:$0 sm:$0xff] }
 0x144   :  { %842 = vmatmul.mubr.msk.bf16.gmra.mxu0 %vm46_vm0, %v316_v19  ;;  %949 = vrsqrt.f32 %v228_v30  ;;  %v944_v24 = vpop.eup %943  ;;  %v305_v2 = vadd.f32 %v1281_v52, %v282_v42  ;;  %v261_v51 = vmul.f32 %v942_v43, %v1205_v13 }
 0x145   :  { %845 = vmatprep.mubr.msk.bf16.mxu0 %vm1011_vm1, %v1010_v63  ;;  %951 = vrsqrt.f32 %v231_v37  ;;  %v304_v54 = vadd.f32 %v1281_v52, %v281_v49  ;;  %v260_v55 = vmul.f32 %v944_v24, %v1202_v12 }
 0x146   :  { %953 = vrsqrt.f32 %v230_v45  ;;  %v284_v60 = vmul.f32 %v1274_v41, %v261_v51 }
 0x147   :  { %v318_v59 = vpack.c.bf16 %v305_v2, %v304_v54  ;;  %v283_v13 = vmul.f32 %v1274_v41, %v260_v55  ;;  %955 = vrsqrt.f32 %v233_v46 }
 0x148   :  { %v307_v12 = vadd.f32 %v1281_v52, %v284_v60  ;;  %957 = vrsqrt.f32 %v232_v32 }
 0x149   :  { %v306_v0 = vadd.f32 %v1281_v52, %v283_v13 }
 0x14b   :  { %v319_v4 = vpack.c.bf16 %v307_v12, %v306_v0 }
 0x14c   :  { %846 = vmatmul.mubr.msk.bf16.gmra.mxu0 %vm46_vm0, %v317_v20 }
 0x14d   :  { %849 = vmatprep.mubr.msk.bf16.mxu0 %vm1011_vm1, %v1010_v63 }
 0x14f   :  { %v946_v3 = vpop.eup %945 }
 0x150   :  { %v268_v38 = vmul.f32 %v946_v3, %v1250_v28  ;;  %v948_v61 = vpop.eup %947 }
 0x151   :  { %v950_v28 = vpop.eup %949  ;;  %v263_v58 = vmul.f32 %v948_v61, %v1217_v17 }
 0x152   :  { %v291_v29 = vmul.f32 %v1274_v41, %v268_v38  ;;  %v262_v1 = vmul.f32 %v950_v28, %v1214_v27  ;;  %v952_v6 = vpop.eup %951 }
 0x153   :  { %v286_v5 = vmul.f32 %v1274_v41, %v263_v58  ;;  %v954_v8 = vpop.eup %953  ;;  %v265_v17 = vmul.f32 %v952_v6, %v1229_v21 }
 0x154   :  { %v314_v62 = vadd.f32 %v1281_v52, %v291_v29  ;;  %850 = vmatmul.mubr.msk.bf16.gmra.mxu0 %vm46_vm0, %v318_v59  ;;  %v285_v7 = vmul.f32 %v1274_v41, %v262_v1  ;;  %v264_v27 = vmul.f32 %v954_v8, %v1226_v40  ;;  %v956_v11 = vpop.eup %955 }
 0x155   :  { %853 = vmatprep.mubr.msk.bf16.mxu0 %vm1011_vm1, %v1010_v63  ;;  %v309_v39 = vadd.f32 %v1281_v52, %v286_v5  ;;  %v288_v10 = vmul.f32 %v1274_v41, %v265_v17  ;;  %v958_v15 = vpop.eup %957  ;;  %v267_v21 = vmul.f32 %v956_v11, %v1241_v25  ;;  %v921_v25 = vld [vmem:[%s1563_s5 + $0x18] sm:$0xff]  }
 0x156   :  { %v308_v47 = vadd.f32 %v1281_v52, %v285_v7  ;;  %v287_v14 = vmul.f32 %v1274_v41, %v264_v27  ;;  %v266_v40 = vmul.f32 %v958_v15, %v1238_v50  ;;  %v323_v50 = vpack.c.bf16 %v314_v62, %v314_v62  ;;  %874 = vmatpush3.bf16.msra.mxu1 %v921_v25 }
 0x157   :  { %v311_v18 = vadd.f32 %v1281_v52, %v288_v10  ;;  %v290_v23 = vmul.f32 %v1274_v41, %v267_v21  ;;  %875 = vmatprep.subr.bf16.mxu1 %v1010_v63 }
 0x158   :  { %v320_v9 = vpack.c.bf16 %v309_v39, %v308_v47  ;;  %v310_v19 = vadd.f32 %v1281_v52, %v287_v14  ;;  %v289_v26 = vmul.f32 %v1274_v41, %v266_v40  ;;  %v922_v41 = vld [vmem:[%s1563_s5 + $0x10] sm:$0xff]  }
 0x159   :  { %v313_v16 = vadd.f32 %v1281_v52, %v290_v23 }
 0x15a   :  { %v321_v22 = vpack.c.bf16 %v311_v18, %v310_v19  ;;  %v312_v30 = vadd.f32 %v1281_v52, %v289_v26  ;;  %876 = vmatpush3.bf16.msra.mxu1 %v922_v41  ;;  %v923_v52 = vld [vmem:[%s1563_s5 + $0x8] sm:$0xff]  }
 0x15b   :  { %877 = vmatprep.subr.bf16.mxu1 %v1010_v63 }
 0x15c   :  { %854 = vmatmul.mubr.msk.bf16.gmra.mxu0 %vm46_vm0, %v319_v4  ;;  %v322_v57 = vpack.c.bf16 %v313_v16, %v312_v30 }
 0x15d   :  { %857 = vmatprep.mubr.msk.bf16.mxu0 %vm1011_vm1, %v1010_v63 }
 0x15e   :  { %878 = vmatpush3.bf16.msra.mxu1 %v923_v52 }
 0x15f   :  { %879 = vmatprep.subr.bf16.mxu1 %v1010_v63 }
 0x162   :  { %880 = vmatpush3.bf16.msra.mxu1 %v924_v31 }
 0x164   :  { %858 = vmatmul.mubr.msk.bf16.gmra.mxu0 %vm46_vm0, %v320_v9 }
 0x165   :  { %861 = vmatprep.mubr.msk.bf16.mxu0 %vm1011_vm1, %v1010_v63 }
 0x16c   :  { %862 = vmatmul.mubr.msk.bf16.gmra.mxu0 %vm46_vm0, %v321_v22 }
 0x16d   :  { %865 = vmatprep.mubr.msk.bf16.mxu0 %vm1011_vm1, %v1010_v63 }
 0x174   :  { %866 = vmatmul.mubr.msk.bf16.gmra.mxu0 %vm46_vm0, %v322_v57 }
 0x175   :  { %869 = vmatprep.mubr.msk.bf16.mxu0 %vm1011_vm1, %v1010_v63 }
 0x17c   :  { %870 = vmatmul.mubr.msk.bf16.gmra.mxu0 %vm46_vm0, %v323_v50 }
 0x1fc   :  { %v408_v33 = vpop.f32.mrf.mxu0 }
 0x1fd   :  { %v409_v34 = vadd.f32 %v1374_v56, %v408_v33 }
 0x1fe   :  { %v839_v35 = vpop.f32.mrf.mxu0 }
 0x1ff   :  { %v495_v36 = vmul.f32 0.70710677, %v409_v34  ;;  %v478_v32 = vmul.f32 0.5, %v409_v34 }
 0x200   :  { %v411_v37 = vpop.f32.mrf.mxu0 }
 0x201   :  { %959 = verf.f32 %v495_v36  ;;  %v412_v20 = vadd.f32 %v1374_v56, %v411_v37 }
 0x202   :  { %v840_v42 = vpop.f32.mrf.mxu0 }
 0x203   :  { %v496_v43 = vmul.f32 0.70710677, %v412_v20  ;;  %v479_v13 = vmul.f32 0.5, %v412_v20 }
 0x204   :  { %v416_v44 = vpop.f32.mrf.mxu0 }
 0x205   :  { %961 = verf.f32 %v496_v43  ;;  %v417_v45 = vadd.f32 %v1374_v56, %v416_v44 }
 0x206   :  { %v843_v49 = vpop.f32.mrf.mxu0 }
 0x207   :  { %v497_v24 = vmul.f32 0.70710677, %v417_v45  ;;  %v480_v10 = vmul.f32 0.5, %v417_v45 }
 0x208   :  { %v419_v3 = vpop.f32.mrf.mxu0 }
 0x209   :  { %963 = verf.f32 %v497_v24  ;;  %v420_v48 = vadd.f32 %v1374_v56, %v419_v3 }
 0x20a   :  { %v844_v2 = vpop.f32.mrf.mxu0 }
 0x20b   :  { %v498_v51 = vmul.f32 0.70710677, %v420_v48  ;;  %v481_v11 = vmul.f32 0.5, %v420_v48 }
 0x20c   :  { %v424_v38 = vpop.f32.mrf.mxu0 }
 0x20d   :  { %965 = verf.f32 %v498_v51  ;;  %v425_v53 = vadd.f32 %v1374_v56, %v424_v38 }
 0x20e   :  { %v960_v54 = vpop.eup %959  ;;  %v847_v55 = vpop.f32.mrf.mxu0 }
 0x20f   :  { %v499_v29 = vmul.f32 0.70710677, %v425_v53  ;;  %v529_v59 = vadd.f32 1.0, %v960_v54  ;;  %v482_v52 = vmul.f32 0.5, %v425_v53 }
 0x210   :  { %v427_v46 = vpop.f32.mrf.mxu0 }
 0x211   :  { %967 = verf.f32 %v499_v29  ;;  %v428_v60 = vadd.f32 %v1374_v56, %v427_v46  ;;  %v546_v0 = vmul.f32 %v529_v59, %v478_v32 }
 0x212   :  { %v962_v61 = vpop.eup %961  ;;  %v848_v62 = vpop.f32.mrf.mxu0 }
 0x213   :  { %v530_v28 = vadd.f32 1.0, %v962_v61  ;;  %v500_v12 = vmul.f32 0.70710677, %v428_v60  ;;  %v483_v31 = vmul.f32 0.5, %v428_v60 }
 0x214   :  { %v432_v58 = vpop.f32.mrf.mxu0 }
 0x215   :  { %v547_v1 = vmul.f32 %v530_v28, %v479_v13  ;;  %969 = verf.f32 %v500_v12  ;;  %v433_v4 = vadd.f32 %v1374_v56, %v432_v58 }
 0x216   :  { %v964_v5 = vpop.eup %963  ;;  %v851_v6 = vpop.f32.mrf.mxu0 }
 0x217   :  { %v563_v7 = vpack.c.bf16 %v547_v1, %v546_v0  ;;  %v501_v8 = vmul.f32 0.70710677, %v433_v4  ;;  %v531_v17 = vadd.f32 1.0, %v964_v5  ;;  %v484_v51 = vmul.f32 0.5, %v433_v4 }
 0x218   :  { %v435_v39 = vpop.f32.mrf.mxu0 }
 0x219   :  { %971 = verf.f32 %v501_v8  ;;  %v436_v47 = vadd.f32 %v1374_v56, %v435_v39  ;;  %882 = vmatmul.mubr.msk.bf16.vlgmr.msra.gmra.mxu1 %vm611_vm2, %v563_v7  ;;  %v548_v21 = vmul.f32 %v531_v17, %v480_v10 }
 0x21a   :  { %v966_v27 = vpop.eup %965  ;;  %v852_v9 = vpop.f32.mrf.mxu0  ;;  %885 = vmatprep.mubr.msk.bf16.mxu1 %vm1011_vm1, %v1010_v63 }
 0x21b   :  { %v532_v14 = vadd.f32 1.0, %v966_v27  ;;  %v502_v15 = vmul.f32 0.70710677, %v436_v47  ;;  %v485_v38 = vmul.f32 0.5, %v436_v47 }
 0x21c   :  { %v440_v18 = vpop.f32.mrf.mxu0 }
 0x21d   :  { %v549_v19 = vmul.f32 %v532_v14, %v481_v11  ;;  %973 = verf.f32 %v502_v15  ;;  %v441_v40 = vadd.f32 %v1374_v56, %v440_v18 }
 0x21e   :  { %v968_v22 = vpop.eup %967  ;;  %v855_v23 = vpop.f32.mrf.mxu0 }
 0x21f   :  { %v564_v26 = vpack.c.bf16 %v549_v19, %v548_v21  ;;  %v503_v16 = vmul.f32 0.70710677, %v441_v40  ;;  %v533_v57 = vadd.f32 1.0, %v968_v22  ;;  %v486_v1 = vmul.f32 0.5, %v441_v40 }
 0x220   :  { %v443_v30 = vpop.f32.mrf.mxu0 }
 0x221   :  { %975 = verf.f32 %v503_v16  ;;  %v444_v50 = vadd.f32 %v1374_v56, %v443_v30  ;;  %886 = vmatmul.mubr.msk.bf16.gmra.mxu1 %vm611_vm2, %v564_v26  ;;  %v550_v36 = vmul.f32 %v533_v57, %v482_v52 }
 0x222   :  { %v970_v25 = vpop.eup %969  ;;  %v856_v41 = vpop.f32.mrf.mxu0  ;;  %889 = vmatprep.mubr.msk.bf16.mxu1 %vm1011_vm1, %v1010_v63 }
 0x223   :  { %v534_v33 = vadd.f32 1.0, %v970_v25  ;;  %v504_v34 = vmul.f32 0.70710677, %v444_v50  ;;  %v487_v4 = vmul.f32 0.5, %v444_v50 }
 0x224   :  { %v448_v35 = vpop.f32.mrf.mxu0 }
 0x225   :  { %v551_v37 = vmul.f32 %v534_v33, %v483_v31  ;;  %977 = verf.f32 %v504_v34  ;;  %v449_v20 = vadd.f32 %v1374_v56, %v448_v35 }
 0x226   :  { %v972_v42 = vpop.eup %971  ;;  %v859_v43 = vpop.f32.mrf.mxu0 }
 0x227   :  { %v565_v44 = vpack.c.bf16 %v551_v37, %v550_v36  ;;  %v505_v45 = vmul.f32 0.70710677, %v449_v20  ;;  %v535_v24 = vadd.f32 1.0, %v972_v42  ;;  %v488_v19 = vmul.f32 0.5, %v449_v20 }
 0x228   :  { %v451_v49 = vpop.f32.mrf.mxu0 }
 0x229   :  { %979 = verf.f32 %v505_v45  ;;  %v452_v3 = vadd.f32 %v1374_v56, %v451_v49  ;;  %890 = vmatmul.mubr.msk.bf16.gmra.mxu1 %vm611_vm2, %v565_v44  ;;  %v552_v29 = vmul.f32 %v535_v24, %v484_v51 }
 0x22a   :  { %v974_v48 = vpop.eup %973  ;;  %v860_v2 = vpop.f32.mrf.mxu0  ;;  %893 = vmatprep.mubr.msk.bf16.mxu1 %vm1011_vm1, %v1010_v63 }
 0x22b   :  { %v536_v53 = vadd.f32 1.0, %v974_v48  ;;  %v506_v54 = vmul.f32 0.70710677, %v452_v3  ;;  %v489_v40 = vmul.f32 0.5, %v452_v3 }
 0x22c   :  { %v456_v55 = vpop.f32.mrf.mxu0 }
 0x22d   :  { %v553_v46 = vmul.f32 %v536_v53, %v485_v38  ;;  %981 = verf.f32 %v506_v54  ;;  %v457_v59 = vadd.f32 %v1374_v56, %v456_v55 }
 0x22e   :  { %v976_v60 = vpop.eup %975  ;;  %v863_v61 = vpop.f32.mrf.mxu0 }
 0x22f   :  { %v566_v62 = vpack.c.bf16 %v553_v46, %v552_v29  ;;  %v507_v32 = vmul.f32 0.70710677, %v457_v59  ;;  %v537_v28 = vadd.f32 1.0, %v976_v60  ;;  %v490_v36 = vmul.f32 0.5, %v457_v59  ;;  %v1421_v59 = vld [vmem:[%s1565_s6] ss:$0 sm:$0xff] }
 0x230   :  { %v459_v13 = vpop.f32.mrf.mxu0 }
 0x231   :  { %983 = verf.f32 %v507_v32  ;;  %v460_v12 = vadd.f32 %v1374_v56, %v459_v13  ;;  %894 = vmatmul.mubr.msk.bf16.gmra.mxu1 %vm611_vm2, %v566_v62  ;;  %v554_v8 = vmul.f32 %v537_v28, %v486_v1  ;;  %v993_v32 = vld [vmem:[%s1559_s0] sm:$0xff] }
 0x232   :  { %v978_v58 = vpop.eup %977  ;;  %v864_v0 = vpop.f32.mrf.mxu0  ;;  %897 = vmatprep.mubr.msk.bf16.mxu1 %vm1011_vm1, %v1010_v63 }
 0x233   :  { %v538_v5 = vadd.f32 1.0, %v978_v58  ;;  %v508_v6 = vmul.f32 0.70710677, %v460_v12  ;;  %v491_v37 = vmul.f32 0.5, %v460_v12  ;;  %v994_v58 = vld [vmem:[%s1559_s0 + $0x8] sm:$0xff] }
 0x234   :  { %v464_v7 = vpop.f32.mrf.mxu0 }
 0x235   :  { %v555_v39 = vmul.f32 %v538_v5, %v487_v4  ;;  %985 = verf.f32 %v508_v6  ;;  %v465_v17 = vadd.f32 %v1374_v56, %v464_v7  ;;  %v995_v6 = vld [vmem:[%s1559_s0 + $0x10] sm:$0xff] }
 0x236   :  { %v980_v47 = vpop.eup %979  ;;  %v867_v27 = vpop.f32.mrf.mxu0 }
 0x237   :  { %v567_v9 = vpack.c.bf16 %v555_v39, %v554_v8  ;;  %v509_v10 = vmul.f32 0.70710677, %v465_v17  ;;  %v539_v14 = vadd.f32 1.0, %v980_v47  ;;  %v492_v24 = vmul.f32 0.5, %v465_v17  ;;  %v996_v47 = vld [vmem:[%s1559_s0 + $0x18] sm:$0xff] }
 0x238   :  { %v467_v11 = vpop.f32.mrf.mxu0 }
 0x239   :  { %987 = verf.f32 %v509_v10  ;;  %v468_v15 = vadd.f32 %v1374_v56, %v467_v11  ;;  %898 = vmatmul.mubr.msk.bf16.gmra.mxu1 %vm611_vm2, %v567_v9  ;;  %v556_v16 = vmul.f32 %v539_v14, %v488_v19  ;;  %v997_v14 = vld [vmem:[%s1559_s0 + $0x20] sm:$0xff] }
 0x23a   :  { %v982_v18 = vpop.eup %981  ;;  %v868_v21 = vpop.f32.mrf.mxu0  ;;  %901 = vmatprep.mubr.msk.bf16.mxu1 %vm1011_vm1, %v1010_v63 }
 0x23b   :  { %v540_v22 = vadd.f32 1.0, %v982_v18  ;;  %v510_v23 = vmul.f32 0.70710677, %v468_v15  ;;  %v493_v3 = vmul.f32 0.5, %v468_v15 }
 0x23c   :  { %v472_v26 = vpop.f32.mrf.mxu0 }
 0x23d   :  { %v557_v30 = vmul.f32 %v540_v22, %v489_v40  ;;  %989 = verf.f32 %v510_v23  ;;  %v473_v57 = vadd.f32 %v1374_v56, %v472_v26  ;;  %v998_v40 = vld [vmem:[%s1559_s0 + $0x28] sm:$0xff] }
 0x23e   :  { %v984_v50 = vpop.eup %983  ;;  %v871_v25 = vpop.f32.mrf.mxu0 }
 0x23f   :  { %v568_v41 = vpack.c.bf16 %v557_v30, %v556_v16  ;;  %v511_v52 = vmul.f32 0.70710677, %v473_v57  ;;  %v541_v33 = vadd.f32 1.0, %v984_v50  ;;  %v494_v55 = vmul.f32 0.5, %v473_v57  ;;  %v999_v30 = vld [vmem:[%s1559_s0 + $0x30] sm:$0xff] }
 0x240   :  { %v475_v31 = vpop.f32.mrf.mxu0 }
 0x241   :  { %991 = verf.f32 %v511_v52  ;;  %902 = vmatmul.mubr.msk.bf16.gmra.mxu1 %vm611_vm2, %v568_v41  ;;  %v558_v42 = vmul.f32 %v541_v33, %v490_v36  ;;  %v1000_v52 = vld [vmem:[%s1559_s0 + $0x38] sm:$0xff]  ;;  %v1001_v36 = vld [vmem:[%s1559_s0 + $0x40] sm:$0xff] }
 0x242   :  { %v986_v34 = vpop.eup %985  ;;  %v872_v35 = vpop.f32.mrf.mxu0  ;;  %905 = vmatprep.mubr.msk.bf16.mxu1 %vm1011_vm1, %v1010_v63 }
 0x243   :  { %v542_v20 = vadd.f32 1.0, %v986_v34 }
 0x245   :  { %v559_v43 = vmul.f32 %v542_v20, %v491_v37 }
 0x246   :  { %v988_v56 = vpop.eup %987 }
 0x247   :  { %v569_v44 = vpack.c.bf16 %v559_v43, %v558_v42  ;;  %v543_v45 = vadd.f32 1.0, %v988_v56  ;;  %v1002_v56 = vld [vmem:[%s1559_s0 + $0x48] sm:$0xff] }
 0x249   :  { %906 = vmatmul.mubr.msk.bf16.gmra.mxu1 %vm611_vm2, %v569_v44  ;;  %v560_v2 = vmul.f32 %v543_v45, %v492_v24 }
 0x24a   :  { %v990_v49 = vpop.eup %989  ;;  %909 = vmatprep.mubr.msk.bf16.mxu1 %vm1011_vm1, %v1010_v63 }
 0x24b   :  { %v544_v48 = vadd.f32 1.0, %v990_v49 }
 0x24d   :  { %v561_v51 = vmul.f32 %v544_v48, %v493_v3  ;;  %v1003_v3 = vld [vmem:[%s1559_s0 + $0x50] sm:$0xff] }
 0x24e   :  { %v992_v38 = vpop.eup %991 }
 0x24f   :  { %v570_v53 = vpack.c.bf16 %v561_v51, %v560_v2  ;;  %v545_v54 = vadd.f32 1.0, %v992_v38 }
 0x251   :  { %910 = vmatmul.mubr.msk.bf16.gmra.mxu1 %vm611_vm2, %v570_v53  ;;  %v562_v29 = vmul.f32 %v545_v54, %v494_v55  ;;  %v1004_v53 = vld [vmem:[%s1559_s0 + $0x58] sm:$0xff] }
 0x252   :  { %913 = vmatprep.mubr.msk.bf16.mxu1 %vm1011_vm1, %v1010_v63 }
 0x253   :  { %v571_v46 = vpack.c.bf16 %v562_v29, %v562_v29 }
 0x259   :  { %914 = vmatmul.mubr.msk.bf16.gmra.mxu1 %vm611_vm2, %v571_v46 }
 0x2d9   :  { %v673_v60 = vpop.f32.mrf.mxu1 }
 0x2da   :  { %v674_v61 = vadd.f32 %v1421_v59, %v673_v60  ;;  %v1005_v60 = vld [vmem:[%s1559_s0 + $0x60] sm:$0xff] }
 0x2db   :  { %v883_v62 = vpop.f32.mrf.mxu1 }
 0x2dc   :  { %v743_v13 = vadd.f32 %v993_v32, %v674_v61 }
 0x2dd   :  { %v676_v28 = vpop.f32.mrf.mxu1 }
 0x2de   :  { %760 = vst.msk [vmem:[%s1566_s7] sm:$0xff] %vm46_vm0, %v743_v13  ;;  %v677_v63 = vadd.f32 %v1421_v59, %v676_v28  ;;  %v1006_v28 = vld [vmem:[%s1559_s0 + $0x68] sm:$0xff] }
 0x2df   :  { %v884_v12 = vpop.f32.mrf.mxu1 }
 0x2e0   :  { %v744_v0 = vadd.f32 %v994_v58, %v677_v63 }
 0x2e1   :  { %v681_v1 = vpop.f32.mrf.mxu1 }
 0x2e2   :  { %761 = vst.msk [vmem:[%s1566_s7 + $0x8] sm:$0xff] %vm46_vm0, %v744_v0  ;;  %v682_v4 = vadd.f32 %v1421_v59, %v681_v1  ;;  %v1007_v1 = vld [vmem:[%s1559_s0 + $0x70] sm:$0xff] }
 0x2e3   :  { %v887_v5 = vpop.f32.mrf.mxu1 }
 0x2e4   :  { %v745_v7 = vadd.f32 %v995_v6, %v682_v4 }
 0x2e5   :  { %v684_v8 = vpop.f32.mrf.mxu1 }
 0x2e6   :  { %762 = vst.msk [vmem:[%s1566_s7 + $0x10] sm:$0xff] %vm46_vm0, %v745_v7  ;;  %v685_v39 = vadd.f32 %v1421_v59, %v684_v8  ;;  %v1008_v8 = vld [vmem:[%s1559_s0 + $0x78] sm:$0xff] }
 0x2e7   :  { %v888_v17 = vpop.f32.mrf.mxu1 }
 0x2e8   :  { %v746_v27 = vadd.f32 %v996_v47, %v685_v39 }
 0x2e9   :  { %v689_v9 = vpop.f32.mrf.mxu1 }
 0x2ea   :  { %763 = vst.msk [vmem:[%s1566_s7 + $0x18] sm:$0xff] %vm46_vm0, %v746_v27  ;;  %v690_v10 = vadd.f32 %v1421_v59, %v689_v9  ;;  %v1009_v9 = vld [vmem:[%s1559_s0 + $0x80] sm:$0xff] }
 0x2eb   :  { %v891_v11 = vpop.f32.mrf.mxu1 }
 0x2ec   :  { %v747_v15 = vadd.f32 %v997_v14, %v690_v10 }
 0x2ed   :  { %v692_v18 = vpop.f32.mrf.mxu1 }
 0x2ee   :  { %764 = vst.msk [vmem:[%s1566_s7 + $0x20] sm:$0xff] %vm46_vm0, %v747_v15  ;;  %v693_v21 = vadd.f32 %v1421_v59, %v692_v18 }
 0x2ef   :  { %v892_v19 = vpop.f32.mrf.mxu1 }
 0x2f0   :  { %v748_v22 = vadd.f32 %v998_v40, %v693_v21 }
 0x2f1   :  { %v697_v23 = vpop.f32.mrf.mxu1 }
 0x2f2   :  { %765 = vst.msk [vmem:[%s1566_s7 + $0x28] sm:$0xff] %vm46_vm0, %v748_v22  ;;  %v698_v26 = vadd.f32 %v1421_v59, %v697_v23 }
 0x2f3   :  { %v895_v16 = vpop.f32.mrf.mxu1 }
 0x2f4   :  { %v749_v57 = vadd.f32 %v999_v30, %v698_v26 }
 0x2f5   :  { %v700_v50 = vpop.f32.mrf.mxu1 }
 0x2f6   :  { %766 = vst.msk [vmem:[%s1566_s7 + $0x30] sm:$0xff] %vm46_vm0, %v749_v57  ;;  %v701_v25 = vadd.f32 %v1421_v59, %v700_v50 }
 0x2f7   :  { %v896_v41 = vpop.f32.mrf.mxu1 }
 0x2f8   :  { %v750_v31 = vadd.f32 %v1000_v52, %v701_v25 }
 0x2f9   :  { %v705_v33 = vpop.f32.mrf.mxu1 }
 0x2fa   :  { %767 = vst.msk [vmem:[%s1566_s7 + $0x38] sm:$0xff] %vm46_vm0, %v750_v31  ;;  %v706_v34 = vadd.f32 %v1421_v59, %v705_v33 }
 0x2fb   :  { %v899_v35 = vpop.f32.mrf.mxu1 }
 0x2fc   :  { %v751_v37 = vadd.f32 %v1001_v36, %v706_v34 }
 0x2fd   :  { %v708_v20 = vpop.f32.mrf.mxu1 }
 0x2fe   :  { %768 = vst.msk [vmem:[%s1566_s7 + $0x40] sm:$0xff] %vm46_vm0, %v751_v37  ;;  %v709_v42 = vadd.f32 %v1421_v59, %v708_v20 }
 0x2ff   :  { %v900_v43 = vpop.f32.mrf.mxu1 }
 0x300   :  { %v752_v44 = vadd.f32 %v1002_v56, %v709_v42 }
 0x301   :  { %v713_v45 = vpop.f32.mrf.mxu1 }
 0x302   :  { %769 = vst.msk [vmem:[%s1566_s7 + $0x48] sm:$0xff] %vm46_vm0, %v752_v44  ;;  %v714_v49 = vadd.f32 %v1421_v59, %v713_v45 }
 0x303   :  { %v903_v24 = vpop.f32.mrf.mxu1 }
 0x304   :  { %v753_v48 = vadd.f32 %v1003_v3, %v714_v49 }
 0x305   :  { %v716_v2 = vpop.f32.mrf.mxu1 }
 0x306   :  { %770 = vst.msk [vmem:[%s1566_s7 + $0x50] sm:$0xff] %vm46_vm0, %v753_v48  ;;  %v717_v51 = vadd.f32 %v1421_v59, %v716_v2 }
 0x307   :  { %v904_v38 = vpop.f32.mrf.mxu1 }
 0x308   :  { %v754_v54 = vadd.f32 %v1004_v53, %v717_v51 }
 0x309   :  { %v721_v55 = vpop.f32.mrf.mxu1 }
 0x30a   :  { %771 = vst.msk [vmem:[%s1566_s7 + $0x58] sm:$0xff] %vm46_vm0, %v754_v54  ;;  %v722_v29 = vadd.f32 %v1421_v59, %v721_v55 }
 0x30b   :  { %v907_v46 = vpop.f32.mrf.mxu1 }
 0x30c   :  { %v755_v61 = vadd.f32 %v1005_v60, %v722_v29 }
 0x30d   :  { %v724_v62 = vpop.f32.mrf.mxu1 }
 0x30e   :  { %772 = vst.msk [vmem:[%s1566_s7 + $0x60] sm:$0xff] %vm46_vm0, %v755_v61  ;;  %v725_v32 = vadd.f32 %v1421_v59, %v724_v62 }
 0x30f   :  { %v908_v13 = vpop.f32.mrf.mxu1 }
 0x310   :  { %v756_v63 = vadd.f32 %v1006_v28, %v725_v32 }
 0x311   :  { %v729_v12 = vpop.f32.mrf.mxu1 }
 0x312   :  { %773 = vst.msk [vmem:[%s1566_s7 + $0x68] sm:$0xff] %vm46_vm0, %v756_v63  ;;  %v730_v58 = vadd.f32 %v1421_v59, %v729_v12 }
 0x313   :  { %v911_v0 = vpop.f32.mrf.mxu1 }
 0x314   :  { %v757_v4 = vadd.f32 %v1007_v1, %v730_v58 }
 0x315   :  { %v732_v5 = vpop.f32.mrf.mxu1 }
 0x316   :  { %774 = vst.msk [vmem:[%s1566_s7 + $0x70] sm:$0xff] %vm46_vm0, %v757_v4  ;;  %v733_v6 = vadd.f32 %v1421_v59, %v732_v5 }
 0x317   :  { %v912_v7 = vpop.f32.mrf.mxu1 }
 0x318   :  { %v758_v39 = vadd.f32 %v1008_v8, %v733_v6 }
 0x319   :  { %v737_v17 = vpop.f32.mrf.mxu1 }
 0x31a   :  { %775 = vst.msk [vmem:[%s1566_s7 + $0x78] sm:$0xff] %vm46_vm0, %v758_v39  ;;  %v738_v47 = vadd.f32 %v1421_v59, %v737_v17 }
 0x31b   :  { %v915_v27 = vpop.f32.mrf.mxu1 }
 0x31c   :  { %v759_v10 = vadd.f32 %v1009_v9, %v738_v47 }
 0x31d   :  { %v740_v11 = vpop.f32.mrf.mxu1 }
 0x31e   :  { %776 = vst.msk [vmem:[%s1566_s7 + $0x80] sm:$0xff] %vm46_vm0, %v759_v10 }
 0x31f   :  { %v916_v14 = vpop.f32.mrf.mxu1 }

// kernel: vit_forward.7
= control target key start
LH: loop header
LB: loop body
LE: loop exit
PB: predicated region body
PF: predicated region fallthrough
CT: control target
= control target key end

     0   :  { %s1940_s27 = smov 0   ;;  %s1942_s28 = smov 0   ;;  %s2363_s0 = inlined_call_operand.vmem [shape: f32[2,65,32], index: 0, kind: input, shape index: {}]   ;;  %s2364_s1 = inlined_call_operand.vmem [shape: f32[1,32], index: 1, kind: input, shape index: {}]   ;;  %s2365_s2 = inlined_call_operand.vmem [shape: f32[1,32], index: 2, kind: input, shape index: {}]   ;;  %s2366_s3 = inlined_call_operand.vmem [shape: bf16[4,32,8], index: 3, kind: input, shape index: {}]   ;;  %s2367_s4 = inlined_call_operand.vmem [shape: bf16[4,32,8], index: 4, kind: input, shape index: {}]   ;;  %s2368_s5 = inlined_call_operand.vmem [shape: bf16[4,32,8], index: 5, kind: input, shape index: {}]   ;;  %s2369_s6 = inlined_call_operand.vmem [shape: bf16[4,8,32], index: 6, kind: input, shape index: {}]   ;;  %s2370_s7 = inlined_call_operand.vmem [shape: f32[1,32], index: 7, kind: input, shape index: {}]   ;;  %s2371_s8 = inlined_call_operand.vmem [shape: f32[2,65,32], index: 8, kind: output, shape index: {}]  }
   0x1   :  { %s1944_s29 = smov 0   ;;  %s1946_s30 = smov 0  }
   0x2   :  { %s1948_s9 = smov 0  }
   0x3 LB: > { %s27_s10 = sadd.s32 1, %s1881_s29  ;;  %s30_s11 = sadd.s32 1, %s1885_s30  ;;  %s1889_s9 = sphi %s1948_s9, %s18_s9   ;;  %s1885_s30 = sphi %s1946_s30, %s2375_s30   ;;  %s1881_s29 = sphi %s1944_s29, %s2374_s29   ;;  %s1877_s28 = sphi %s1942_s28, %s2373_s28   ;;  %s1873_s27 = sphi %s1940_s27, %s2372_s27  }
   0x4   : > { %p28_p0 = scmp.ge.s32.totalorder %s27_s10, 4  ;;  %p1489_p1 = scmp.ge.s32.totalorder %s1889_s9, 1 }
   0x5   : > { %p313_p2 = scmp.lt.s32.totalorder %s1889_s9, 9 }
   0x6   : > { %s2377_s10 = smov (%p28_p0, %s27_s10), 0  ;;  %s2379_s11 = smov (!%p28_p0, %s30_s11), %s1885_s30 }
   0x7   : > { %p314_p3 = pnand %p1489_p1, %p313_p2  ;;  %p32_p4 = scmp.ge.s32.totalorder %s2379_s11, 2 }
   0x8   : > { %p366_p5 = scmp.lt.s32.totalorder (!%p314_p3), %s1877_s28, 1  ;;  %p371_p6 = scmp.lt.s32.totalorder (!%p314_p3), %s1873_s27, 3 }
   0x9   : > { %s2381_s11 = smov (%p32_p4, %s2379_s11), 0  ;;  %317 = sbr.rel (%p314_p3) target bundleno = 1582 (0x62e), region = 52 }
   0xa   : > { %p1499_p7 = scmp.ne.s32.totalorder (!%p314_p3), %s1873_s27, 0 }
   0xe   : > { %s2383_s28 = smov (!%p366_p5, %s1877_s28), 1 }
   0xf   : > { %s372_s12 = scalar_select %p371_p6, %s1873_s27, 3 }
  0x10   : > { %s1746_s13 = smul.u32 72, %s2383_s28 }
  0x11   : > { %s1542_s14 = sshll.u32 %s372_s12, 4  ;;  %s1497_s15 = sshll.u32 %s372_s12, 2 }
  0x12   : > { %s370_s18 = scalar_lea.vmem %s2363_s0, %s1746_s13  ;;  %s1980_s21 = scalar_lea.vmem %s2366_s3, %s1542_s14 }
  0x13   : > { %s1985_s24 = scalar_lea.vmem %s2367_s4, %s1542_s14  ;;  %s1990_s28 = scalar_lea.vmem %s2368_s5, %s1542_s14  ;;  %v1992_v0 = vld [vmem:[%s370_s18] sm:$0xff]  ;;  %v1994_v1 = vld [vmem:[%s370_s18 + $0x8] sm:$0xff]  ;;  %v1996_v2 = vld [vmem:[%s370_s18 + $0x10] sm:$0xff] }
  0x14   : > { %s2001_s17 = scalar_lea.vmem %s2369_s6, %s1497_s15  ;;  %s2006_s22 = scalar_lea.vmem %s2371_s8, %s1746_s13  ;;  %v2008_v3 = vld [vmem:[%s370_s18 + $0x18] sm:$0xff]  ;;  %v2010_v4 = vld [vmem:[%s370_s18 + $0x20] sm:$0xff]  ;;  %v2012_v5 = vld [vmem:[%s370_s18 + $0x28] sm:$0xff] }
  0x15   : > { %v2014_v6 = vld [vmem:[%s370_s18 + $0x30] sm:$0xff]  ;;  %v2016_v7 = vld [vmem:[%s370_s18 + $0x38] sm:$0xff]  ;;  %v2018_v8 = vld [vmem:[%s370_s18 + $0x40] sm:$0x1]  ;;  %408 = sbr.rel (%p1499_p7) target bundleno = 353 (0x161), region = 56 }
  0x1a   : > { %vm411_vm0 = vcmask 261120   ;;  %vm436_vm1 = vcmask 253952   ;;  %v1891_v11 = vmov 0.0  }
  0x1b   : > { %v412_v9 = vsel %vm411_vm0, %v1992_v0, 0.0  ;;  %v418_v10 = vsel %vm411_vm0, %v1996_v2, 0.0  ;;  %570 = vst.msk [vmem:[#allocation3] sm:$0xff] %vm411_vm0, %v1891_v11  ;;  %571 = vst.msk [vmem:[#allocation3 + $0x8] sm:$0xff] %vm411_vm0, %v1891_v11  ;;  %v415_v12 = vsel %vm411_vm0, %v1994_v1, 0.0  ;;  %v421_v13 = vsel %vm411_vm0, %v2008_v3, 0.0 }
  0x1c   : > { %572 = vst.msk [vmem:[#allocation3 + $0x10] sm:$0xff] %vm411_vm0, %v1891_v11  ;;  %573 = vst.msk [vmem:[#allocation3 + $0x18] sm:$0xff] %vm411_vm0, %v1891_v11  ;;  %413 = vadd.xlane.f32.xlu0 %v412_v9  ;;  %419 = vadd.xlane.f32.xlu1 %v418_v10  ;;  %v424_v14 = vsel %vm411_vm0, %v2010_v4, 0.0  ;;  %v427_v15 = vsel %vm411_vm0, %v2012_v5, 0.0  ;;  %v430_v16 = vsel %vm411_vm0, %v2014_v6, 0.0  ;;  %v433_v17 = vsel %vm411_vm0, %v2016_v7, 0.0 }
  0x1d   : > { %574 = vst.msk [vmem:[#allocation3 + $0x20] sm:$0xff] %vm411_vm0, %v1891_v11  ;;  %575 = vst.msk [vmem:[#allocation3 + $0x28] sm:$0xff] %vm411_vm0, %v1891_v11  ;;  %v437_v18 = vsel %vm436_vm1, %v2018_v8, 0.0 }
  0x1e   : > { %576 = vst.msk [vmem:[#allocation3 + $0x30] sm:$0xff] %vm411_vm0, %v1891_v11  ;;  %577 = vst.msk [vmem:[#allocation3 + $0x38] sm:$0xff] %vm411_vm0, %v1891_v11 }
  0x1f   : > { %578 = vst.msk [vmem:[#allocation3 + $0x40] sm:$0x1] %vm436_vm1, %v1891_v11 }
  0x20   : > { %416 = vadd.xlane.f32.xlu0 %v415_v12  ;;  %422 = vadd.xlane.f32.xlu1 %v421_v13 }
  0x24   : > { %425 = vadd.xlane.f32.xlu0 %v424_v14  ;;  %428 = vadd.xlane.f32.xlu1 %v427_v15 }
  0x28   : > { %431 = vadd.xlane.f32.xlu0 %v430_v16  ;;  %434 = vadd.xlane.f32.xlu1 %v433_v17 }
  0x2c   : > { %438 = vadd.xlane.f32.xlu0 %v437_v18 }
  0xa5   : > { %v414_v19 = vpop.xlane.xlu0 %413  ;;  %v420_v20 = vpop.xlane.xlu1 %419 }
  0xa6   : > { %v441_v21 = vmul.f32 0.03125, %v414_v19  ;;  %v443_v22 = vmul.f32 0.03125, %v420_v20 }
  0xa8   : > { %v2049_v23 = vsub.f32 %v1992_v0, %v441_v21  ;;  %v2052_v24 = vsub.f32 %v1996_v2, %v443_v22 }
  0xa9   : > { %v417_v25 = vpop.xlane.xlu0 %416  ;;  %v423_v26 = vpop.xlane.xlu1 %422 }
  0xaa   : > { %v442_v27 = vmul.f32 0.03125, %v417_v25  ;;  %v444_v28 = vmul.f32 0.03125, %v423_v26  ;;  %v459_v29 = vmul.f32 %v2049_v23, %v2049_v23  ;;  %v461_v30 = vmul.f32 %v2052_v24, %v2052_v24 }
  0xac   : > { %v2059_v31 = vsub.f32 %v1994_v1, %v442_v27  ;;  %v2062_v32 = vsub.f32 %v2008_v3, %v444_v28  ;;  %v468_v33 = vsel %vm411_vm0, %v459_v29, 0.0  ;;  %v474_v36 = vsel %vm411_vm0, %v461_v30, 0.0 }
  0xad   : > { %469 = vadd.xlane.f32.xlu1 %v468_v33  ;;  %v426_v34 = vpop.xlane.xlu0 %425  ;;  %v429_v35 = vpop.xlane.xlu1 %428 }
  0xae   : > { %v445_v37 = vmul.f32 0.03125, %v426_v34  ;;  %v446_v38 = vmul.f32 0.03125, %v429_v35  ;;  %v460_v39 = vmul.f32 %v2059_v31, %v2059_v31  ;;  %v462_v40 = vmul.f32 %v2062_v32, %v2062_v32 }
  0xb0   : > { %v2071_v41 = vsub.f32 %v2010_v4, %v445_v37  ;;  %v2074_v42 = vsub.f32 %v2012_v5, %v446_v38  ;;  %v471_v43 = vsel %vm411_vm0, %v460_v39, 0.0  ;;  %v477_v46 = vsel %vm411_vm0, %v462_v40, 0.0  ;;  %v1500_v39 = vld [vmem:[%s2364_s1] ss:$0 sm:$0xff] }
  0xb1   : > { %475 = vadd.xlane.f32.xlu1 %v474_v36  ;;  %472 = vadd.xlane.f32.xlu0 %v471_v43  ;;  %v432_v44 = vpop.xlane.xlu0 %431  ;;  %v435_v45 = vpop.xlane.xlu1 %434 }
  0xb2   : > { %v447_v47 = vmul.f32 0.03125, %v432_v44  ;;  %v448_v48 = vmul.f32 0.03125, %v435_v45  ;;  %v463_v49 = vmul.f32 %v2071_v41, %v2071_v41  ;;  %v464_v50 = vmul.f32 %v2074_v42, %v2074_v42  ;;  %v1501_v45 = vld [vmem:[%s2365_s2] ss:$0 sm:$0xff] }
  0xb4   : > { %v2083_v51 = vsub.f32 %v2014_v6, %v447_v47  ;;  %v2086_v52 = vsub.f32 %v2016_v7, %v448_v48  ;;  %v480_v53 = vsel %vm411_vm0, %v463_v49, 0.0  ;;  %v483_v56 = vsel %vm411_vm0, %v464_v50, 0.0 }
  0xb5   : > { %478 = vadd.xlane.f32.xlu0 %v477_v46  ;;  %481 = vadd.xlane.f32.xlu1 %v480_v53  ;;  %v439_v54 = vpop.xlane.xlu0 %438 }
  0xb6   : > { %v449_v55 = vmul.f32 0.03125, %v439_v54  ;;  %v465_v57 = vmul.f32 %v2083_v51, %v2083_v51  ;;  %v466_v58 = vmul.f32 %v2086_v52, %v2086_v52 }
  0xb8   : > { %v2095_v59 = vsub.f32 %v2018_v8, %v449_v55  ;;  %v486_v60 = vsel %vm411_vm0, %v465_v57, 0.0  ;;  %v489_v61 = vsel %vm411_vm0, %v466_v58, 0.0 }
  0xb9   : > { %484 = vadd.xlane.f32.xlu0 %v483_v56  ;;  %487 = vadd.xlane.f32.xlu1 %v486_v60 }
  0xba   : > { %v467_v62 = vmul.f32 %v2095_v59, %v2095_v59 }
  0xbc   : > { %v492_v63 = vsel %vm436_vm1, %v467_v62, 0.0 }
  0xbd   : > { %490 = vadd.xlane.f32.xlu0 %v489_v61  ;;  %493 = vadd.xlane.f32.xlu1 %v492_v63 }
 0x136   : > { %v470_v9 = vpop.xlane.xlu1 %469 }
 0x137   : > { %v495_v10 = vmul.f32 0.03125, %v470_v9 }
 0x139   : > { %v504_v11 = vadd.f32 1e-05, %v495_v10 }
 0x13a   : > { %v476_v12 = vpop.xlane.xlu1 %475  ;;  %v473_v13 = vpop.xlane.xlu0 %472 }
 0x13b   : > { %1791 = vrsqrt.f32 %v504_v11  ;;  %v497_v14 = vmul.f32 0.03125, %v476_v12  ;;  %v496_v15 = vmul.f32 0.03125, %v473_v13 }
 0x13d   : > { %v506_v16 = vadd.f32 1e-05, %v497_v14  ;;  %v505_v17 = vadd.f32 1e-05, %v496_v15 }
 0x13e   : > { %v482_v18 = vpop.xlane.xlu1 %481  ;;  %v479_v19 = vpop.xlane.xlu0 %478 }
 0x13f   : > { %1793 = vrsqrt.f32 %v506_v16  ;;  %v499_v20 = vmul.f32 0.03125, %v482_v18  ;;  %v498_v21 = vmul.f32 0.03125, %v479_v19 }
 0x140   : > { %1795 = vrsqrt.f32 %v505_v17 }
 0x141   : > { %v508_v22 = vadd.f32 1e-05, %v499_v20  ;;  %v507_v25 = vadd.f32 1e-05, %v498_v21 }
 0x142   : > { %v488_v26 = vpop.xlane.xlu1 %487  ;;  %v485_v27 = vpop.xlane.xlu0 %484 }
 0x143   : > { %1797 = vrsqrt.f32 %v508_v22  ;;  %v501_v28 = vmul.f32 0.03125, %v488_v26  ;;  %v500_v29 = vmul.f32 0.03125, %v485_v27 }
 0x144   : > { %1799 = vrsqrt.f32 %v507_v25 }
 0x145   : > { %v510_v30 = vadd.f32 1e-05, %v501_v28  ;;  %v509_v33 = vadd.f32 1e-05, %v500_v29 }
 0x146   : > { %v494_v34 = vpop.xlane.xlu1 %493  ;;  %v491_v35 = vpop.xlane.xlu0 %490 }
 0x147   : > { %1801 = vrsqrt.f32 %v510_v30  ;;  %v503_v36 = vmul.f32 0.03125, %v494_v34  ;;  %v502_v37 = vmul.f32 0.03125, %v491_v35 }
 0x148   : > { %v1792_v38 = vpop.eup %1791  ;;  %1803 = vrsqrt.f32 %v509_v33 }
 0x149   : > { %v522_v40 = vmul.f32 %v1792_v38, %v2049_v23  ;;  %v512_v43 = vadd.f32 1e-05, %v503_v36  ;;  %v511_v44 = vadd.f32 1e-05, %v502_v37 }
 0x14b   : > { %v537_v46 = vmul.f32 %v1500_v39, %v522_v40  ;;  %1805 = vrsqrt.f32 %v512_v43 }
 0x14c   : > { %v1794_v47 = vpop.eup %1793  ;;  %1807 = vrsqrt.f32 %v511_v44 }
 0x14d   : > { %v1796_v48 = vpop.eup %1795  ;;  %v552_v49 = vadd.f32 %v1501_v45, %v537_v46  ;;  %v524_v50 = vmul.f32 %v1794_v47, %v2052_v24 }
 0x14e   : > { %v523_v53 = vmul.f32 %v1796_v48, %v2059_v31 }
 0x14f   : > { %561 = vst.msk [vmem:[#allocation2] sm:$0xff] %vm411_vm0, %v552_v49  ;;  %v539_v54 = vmul.f32 %v1500_v39, %v524_v50 }
 0x150   : > { %v1798_v23 = vpop.eup %1797  ;;  %v538_v55 = vmul.f32 %v1500_v39, %v523_v53 }
 0x151   : > { %v1800_v56 = vpop.eup %1799  ;;  %v554_v57 = vadd.f32 %v1501_v45, %v539_v54  ;;  %v526_v58 = vmul.f32 %v1798_v23, %v2071_v41 }
 0x152   : > { %v553_v60 = vadd.f32 %v1501_v45, %v538_v55  ;;  %v525_v61 = vmul.f32 %v1800_v56, %v2062_v32 }
 0x153   : > { %563 = vst.msk [vmem:[#allocation2 + $0x10] sm:$0xff] %vm411_vm0, %v554_v57  ;;  %v541_v62 = vmul.f32 %v1500_v39, %v526_v58 }
 0x154   : > { %v1802_v63 = vpop.eup %1801  ;;  %562 = vst.msk [vmem:[#allocation2 + $0x8] sm:$0xff] %vm411_vm0, %v553_v60  ;;  %v540_v24 = vmul.f32 %v1500_v39, %v525_v61 }
 0x155   : > { %v1804_v31 = vpop.eup %1803  ;;  %v556_v9 = vadd.f32 %v1501_v45, %v541_v62  ;;  %v528_v10 = vmul.f32 %v1802_v63, %v2083_v51 }
 0x156   : > { %v555_v11 = vadd.f32 %v1501_v45, %v540_v24  ;;  %v527_v12 = vmul.f32 %v1804_v31, %v2074_v42 }
 0x157   : > { %565 = vst.msk [vmem:[#allocation2 + $0x20] sm:$0xff] %vm411_vm0, %v556_v9  ;;  %v543_v41 = vmul.f32 %v1500_v39, %v528_v10 }
 0x158   : > { %v1806_v13 = vpop.eup %1805  ;;  %564 = vst.msk [vmem:[#allocation2 + $0x18] sm:$0xff] %vm411_vm0, %v555_v11  ;;  %v542_v32 = vmul.f32 %v1500_v39, %v527_v12 }
 0x159   : > { %v1808_v14 = vpop.eup %1807  ;;  %v558_v15 = vadd.f32 %v1501_v45, %v543_v41  ;;  %v530_v16 = vmul.f32 %v1806_v13, %v2095_v59 }
 0x15a   : > { %v557_v17 = vadd.f32 %v1501_v45, %v542_v32  ;;  %v529_v18 = vmul.f32 %v1808_v14, %v2086_v52 }
 0x15b   : > { %567 = vst.msk [vmem:[#allocation2 + $0x30] sm:$0xff] %vm411_vm0, %v558_v15  ;;  %v545_v51 = vmul.f32 %v1500_v39, %v530_v16 }
 0x15c   : > { %566 = vst.msk [vmem:[#allocation2 + $0x28] sm:$0xff] %vm411_vm0, %v557_v17  ;;  %v544_v42 = vmul.f32 %v1500_v39, %v529_v18 }
 0x15d   : > { %v560_v19 = vadd.f32 %v1501_v45, %v545_v51 }
 0x15e   : > { %v559_v20 = vadd.f32 %v1501_v45, %v544_v42 }
 0x15f   : > { %569 = vst.msk [vmem:[#allocation2 + $0x40] sm:$0x1] %vm436_vm1, %v560_v19 }
 0x160   : > { %568 = vst.msk [vmem:[#allocation2 + $0x38] sm:$0xff] %vm411_vm0, %v559_v20 }
 0x161 PF: > { %v1809_v59 = vld [vmem:[%s1985_s24 + $0x8] sm:$0xff]   ;;  %v1892_v21 = vmov 0.0   ;;  %v1810_v52 = vld [vmem:[%s1985_s24] sm:$0xff]   ;;  %vm1893_vm2 = vmmov 0   ;;  %vm609_vm3 = vcmask 261120   ;;  %v581_v29 = vld [vmem:[#allocation2 + $0x10] sm:$0xff] }
 0x162   : > { %1616 = vmatprep.subr.bf16.mxu1 %v1892_v21  ;;  %1592 = vmatprep.subr.bf16.mxu0 %v1892_v21  ;;  %v579_v22 = vld [vmem:[#allocation2] sm:$0xff]  ;;  %v580_v25 = vld [vmem:[#allocation2 + $0x8] sm:$0xff]  ;;  %v582_v30 = vld [vmem:[#allocation2 + $0x18] sm:$0xff]  ;;  %vm883_vm4 = vcmask 64512   ;;  %vm995_vm5 = vcmask 531456   ;;  %vm1020_vm6 = vcmask 524288  }
 0x163   : > { %1617 = vmatpush3.bf16.msra.mxu1 %v1809_v59  ;;  %1620 = vmatprep.mubr.msk.bf16.mxu1 %vm1893_vm2, %v1892_v21  ;;  %v588_v26 = vpack.c.bf16 %v580_v25, %v579_v22  ;;  %v1811_v27 = vld [vmem:[%s1980_s21 + $0x8] sm:$0xff]   ;;  %v1812_v28 = vld [vmem:[%s1980_s21] sm:$0xff]   ;;  %v589_v33 = vpack.c.bf16 %v582_v30, %v581_v29  ;;  %v585_v37 = vld [vmem:[#allocation2 + $0x30] sm:$0xff]  ;;  %vm1121_vm7 = vcmask 1040384   ;;  %vm1229_vm8 = vcmask 1043456   ;;  %p1538_p8 = scmp.ne.s32.totalorder %s1873_s27, 3 }
 0x164   : > { %1618 = vmatprep.subr.bf16.mxu1 %v1892_v21  ;;  %1596 = vmatprep.mubr.msk.bf16.mxu0 %vm1893_vm2, %v1892_v21  ;;  %v583_v34 = vld [vmem:[#allocation2 + $0x20] sm:$0xff]  ;;  %v584_v35 = vld [vmem:[#allocation2 + $0x28] sm:$0xff]  ;;  %vm1322_vm9 = vcmask 253952  }
 0x165   : > { %1593 = vmatpush3.bf16.msra.mxu0 %v1811_v27  ;;  %v590_v36 = vpack.c.bf16 %v584_v35, %v583_v34  ;;  %v1813_v44 = vld [vmem:[%s1990_s28 + $0x8] sm:$0xff]   ;;  %v1814_v45 = vld [vmem:[%s1990_s28] sm:$0xff]  }
 0x166   : > { %1594 = vmatprep.subr.bf16.mxu0 %v1892_v21  ;;  %v587_v40 = vld [vmem:[#allocation2 + $0x40] sm:$0x1] }
 0x167   : > { %1619 = vmatpush3.bf16.msra.mxu1 %v1810_v52  ;;  %v586_v38 = vld [vmem:[#allocation2 + $0x38] sm:$0xff]  ;;  %v592_v43 = vpack.c.bf16 %v587_v40, %v587_v40 }
 0x168   : > { %1664 = vmatprep.subr.bf16.mxu1 %v1892_v21  ;;  %v591_v39 = vpack.c.bf16 %v586_v38, %v585_v37 }
 0x169   : > { %1595 = vmatpush3.bf16.msra.mxu0 %v1812_v28 }
 0x16a   : > { %1621 = vmatmul.mubr.msk.bf16.vlgmr.msra.gmra.mxu1 %vm609_vm3, %v588_v26  ;;  %1640 = vmatprep.subr.bf16.mxu0 %v1892_v21 }
 0x16b   : > { %1624 = vmatprep.mubr.msk.bf16.mxu1 %vm1893_vm2, %v1892_v21 }
 0x16c   : > { %1597 = vmatmul.mubr.msk.bf16.vlgmr.msra.gmra.mxu0 %vm609_vm3, %v588_v26 }
 0x16d   : > { %1600 = vmatprep.mubr.msk.bf16.mxu0 %vm1893_vm2, %v1892_v21  ;;  %1641 = vmatpush3.bf16.msra.mxu0 %v1813_v44 }
 0x16e   : > { %1642 = vmatprep.subr.bf16.mxu0 %v1892_v21 }
 0x171   : > { %1643 = vmatpush3.bf16.msra.mxu0 %v1814_v45 }
 0x172   : > { %1625 = vmatmul.mubr.msk.bf16.gmra.mxu1 %vm609_vm3, %v589_v33  ;;  %1694 = vmatprep.subr.bf16.mxu0 %v1892_v21 }
 0x173   : > { %1628 = vmatprep.mubr.msk.bf16.mxu1 %vm1893_vm2, %v1892_v21 }
 0x174   : > { %1601 = vmatmul.mubr.msk.bf16.gmra.mxu0 %vm609_vm3, %v589_v33 }
 0x175   : > { %1604 = vmatprep.mubr.msk.bf16.mxu0 %vm1893_vm2, %v1892_v21 }
 0x17a   : > { %1629 = vmatmul.mubr.msk.bf16.gmra.mxu1 %vm609_vm3, %v590_v36 }
 0x17b   : > { %1632 = vmatprep.mubr.msk.bf16.mxu1 %vm1893_vm2, %v1892_v21 }
 0x17c   : > { %1605 = vmatmul.mubr.msk.bf16.gmra.mxu0 %vm609_vm3, %v590_v36 }
 0x17d   : > { %1608 = vmatprep.mubr.msk.bf16.mxu0 %vm1893_vm2, %v1892_v21 }
 0x182   : > { %1633 = vmatmul.mubr.msk.bf16.gmra.mxu1 %vm609_vm3, %v591_v39 }
 0x183   : > { %1636 = vmatprep.mubr.msk.bf16.mxu1 %vm1893_vm2, %v1892_v21 }
 0x184   : > { %1609 = vmatmul.mubr.msk.bf16.gmra.mxu0 %vm609_vm3, %v591_v39 }
 0x185   : > { %1612 = vmatprep.mubr.msk.bf16.mxu0 %vm1893_vm2, %v1892_v21 }
 0x18a   : > { %1637 = vmatmul.mubr.msk.bf16.gmra.mxu1 %vm609_vm3, %v592_v43 }
 0x18b   : > { %1674 = vmatprep.mubr.msk.bf16.mxu1 %vm1893_vm2, %v1892_v21 }
 0x18c   : > { %1613 = vmatmul.mubr.msk.bf16.gmra.mxu0 %vm609_vm3, %v592_v43 }
 0x18d   : > { %1644 = vmatprep.mubr.msk.bf16.mxu0 %vm1893_vm2, %v1892_v21 }
 0x194   : > { %1645 = vmatmul.mubr.msk.bf16.vlgmr.msra.gmra.mxu0 %vm609_vm3, %v588_v26 }
 0x195   : > { %1648 = vmatprep.mubr.msk.bf16.mxu0 %vm1893_vm2, %v1892_v21 }
 0x19c   : > { %1649 = vmatmul.mubr.msk.bf16.gmra.mxu0 %vm609_vm3, %v589_v33 }
 0x19d   : > { %1652 = vmatprep.mubr.msk.bf16.mxu0 %vm1893_vm2, %v1892_v21 }
 0x1a4   : > { %1653 = vmatmul.mubr.msk.bf16.gmra.mxu0 %vm609_vm3, %v590_v36 }
 0x1a5   : > { %1656 = vmatprep.mubr.msk.bf16.mxu0 %vm1893_vm2, %v1892_v21 }
 0x1ac   : > { %1657 = vmatmul.mubr.msk.bf16.gmra.mxu0 %vm609_vm3, %v591_v39 }
 0x1ad   : > { %1660 = vmatprep.mubr.msk.bf16.mxu0 %vm1893_vm2, %v1892_v21 }
 0x1b4   : > { %1661 = vmatmul.mubr.msk.bf16.gmra.mxu0 %vm609_vm3, %v592_v43 }
 0x1b5   : > { %1704 = vmatprep.mubr.msk.bf16.mxu0 %vm1893_vm2, %v1892_v21 }
 0x22a   : > { %v2180_v46 = vpop.f32.mrf.mxu1 }
 0x22c   : > { %v1622_v47 = vpop.f32.mrf.mxu1  ;;  %v2185_v49 = vpop.f32.mrf.mxu0 }
 0x22e   : > { %v2182_v48 = vpop.f32.mrf.mxu1  ;;  %v1598_v53 = vpop.f32.mrf.mxu0 }
 0x22f   : > { %v878_v38 = vpack.c.bf16 %v2182_v48, %v2180_v46 }
 0x230   : > { %v1623_v50 = vpop.f32.mrf.mxu1  ;;  %v662_v23 = vpop.f32.mrf.mxu0 }
 0x231   : > { %v900_v39 = vsel %vm883_vm4, %v878_v38, 0  ;;  %v873_v40 = vpack.c.bf16 %v662_v23, %v2185_v49 }
 0x232   : > { %v755_v54 = vpop.f32.mrf.mxu1  ;;  %v1599_v56 = vpop.f32.mrf.mxu0 }
 0x234   : > { %v1626_v55 = vpop.f32.mrf.mxu1  ;;  %v667_v58 = vpop.f32.mrf.mxu0 }
 0x236   : > { %v758_v57 = vpop.f32.mrf.mxu1  ;;  %v1602_v61 = vpop.f32.mrf.mxu0 }
 0x237   : > { %v879_v36 = vpack.c.bf16 %v758_v57, %v755_v54 }
 0x238   : > { %v1627_v60 = vpop.f32.mrf.mxu1  ;;  %v670_v63 = vpop.f32.mrf.mxu0 }
 0x239   : > { %v903_v37 = vsel %vm883_vm4, %v879_v36, 0  ;;  %v874_v43 = vpack.c.bf16 %v670_v63, %v667_v58 }
 0x23a   : > { %v763_v62 = vpop.f32.mrf.mxu1  ;;  %v1603_v31 = vpop.f32.mrf.mxu0 }
 0x23c   : > { %v1630_v24 = vpop.f32.mrf.mxu1  ;;  %v675_v10 = vpop.f32.mrf.mxu0 }
 0x23e   : > { %v766_v9 = vpop.f32.mrf.mxu1  ;;  %v1606_v12 = vpop.f32.mrf.mxu0 }
 0x23f   : > { %v880_v34 = vpack.c.bf16 %v766_v9, %v763_v62 }
 0x240   : > { %v1631_v11 = vpop.f32.mrf.mxu1  ;;  %v678_v13 = vpop.f32.mrf.mxu0 }
 0x241   : > { %v906_v35 = vsel %vm883_vm4, %v880_v34, 0  ;;  %v875_v44 = vpack.c.bf16 %v678_v13, %v675_v10 }
 0x242   : > { %v771_v41 = vpop.f32.mrf.mxu1  ;;  %v1607_v14 = vpop.f32.mrf.mxu0 }
 0x244   : > { %v1634_v32 = vpop.f32.mrf.mxu1  ;;  %v683_v16 = vpop.f32.mrf.mxu0 }
 0x246   : > { %v774_v15 = vpop.f32.mrf.mxu1  ;;  %v1610_v18 = vpop.f32.mrf.mxu0 }
 0x247   : > { %v881_v27 = vpack.c.bf16 %v774_v15, %v771_v41 }
 0x248   : > { %v1635_v17 = vpop.f32.mrf.mxu1  ;;  %v686_v19 = vpop.f32.mrf.mxu0 }
 0x249   : > { %v909_v30 = vsel %vm883_vm4, %v881_v27, 0  ;;  %v876_v45 = vpack.c.bf16 %v686_v19, %v683_v16 }
 0x24a   : > { %v779_v51 = vpop.f32.mrf.mxu1  ;;  %v1611_v52 = vpop.f32.mrf.mxu0 }
 0x24b   : > { %v882_v42 = vpack.c.bf16 %v779_v51, %v779_v51 }
 0x24c   : > { %v1638_v20 = vpop.f32.mrf.mxu1  ;;  %v691_v25 = vpop.f32.mrf.mxu0 }
 0x24d   : > { %v912_v59 = vsel %vm883_vm4, %v882_v42, 0  ;;  %v877_v46 = vpack.c.bf16 %v691_v25, %v691_v25 }
 0x24e   : > { %v782_v22 = vpop.f32.mrf.mxu1  ;;  %1665 = vmatpush3.bf16.xpose.msra.mxu1 %v912_v59  ;;  %v1614_v28 = vpop.f32.mrf.mxu0 }
 0x24f   : > { %1666 = vmatprep.subr.bf16.mxu1 %v1892_v21 }
 0x250   : > { %v1639_v26 = vpop.f32.mrf.mxu1  ;;  %v694_v29 = vpop.f32.mrf.mxu0 }
 0x252   : > { %v1615_v33 = vpop.f32.mrf.mxu0 }
 0x254   : > { %v835_v27 = vpop.f32.mrf.mxu0 }
 0x256   : > { %1667 = vmatpush3.bf16.xpose.msra.mxu1 %v909_v30  ;;  %v1646_v28 = vpop.f32.mrf.mxu0 }
 0x257   : > { %1668 = vmatprep.subr.bf16.mxu1 %v1892_v21 }
 0x258   : > { %v838_v29 = vpop.f32.mrf.mxu0 }
 0x25a   : > { %v1647_v30 = vpop.f32.mrf.mxu0 }
 0x25c   : > { %v843_v33 = vpop.f32.mrf.mxu0 }
 0x25e   : > { %1669 = vmatpush3.bf16.xpose.msra.mxu1 %v906_v35  ;;  %v1650_v34 = vpop.f32.mrf.mxu0 }
 0x25f   : > { %1670 = vmatprep.subr.bf16.mxu1 %v1892_v21 }
 0x260   : > { %v846_v35 = vpop.f32.mrf.mxu0 }
 0x262   : > { %v1651_v36 = vpop.f32.mrf.mxu0 }
 0x266   : > { %1671 = vmatpush3.bf16.xpose.msra.mxu1 %v903_v37  ;;  %v851_v37 = vpop.f32.mrf.mxu0 }
 0x267   : > { %1672 = vmatprep.subr.bf16.mxu1 %v1892_v21 }
 0x268   : > { %v1654_v38 = vpop.f32.mrf.mxu0 }
 0x26e   : > { %1673 = vmatpush3.bf16.xpose.msra.mxu1 %v900_v39  ;;  %v854_v39 = vpop.f32.mrf.mxu0 }
 0x26f   : > { %1724 = vmatprep.subr.bf16.mxu1 %v1892_v21 }
 0x275   : > { %1675 = vmatmul.mubr.msk.bf16.vlgmr.msra.gmra.mxu1 %vm883_vm4, %v873_v40  ;;  %v1655_v40 = vpop.f32.mrf.mxu0 }
 0x276   : > { %1678 = vmatprep.mubr.msk.bf16.mxu1 %vm1893_vm2, %v1892_v21 }
 0x27d   : > { %1679 = vmatmul.mubr.msk.bf16.gmra.mxu1 %vm883_vm4, %v874_v43  ;;  %v859_v43 = vpop.f32.mrf.mxu0 }
 0x27e   : > { %1682 = vmatprep.mubr.msk.bf16.mxu1 %vm1893_vm2, %v1892_v21 }
 0x285   : > { %1683 = vmatmul.mubr.msk.bf16.gmra.mxu1 %vm883_vm4, %v875_v44  ;;  %v1658_v44 = vpop.f32.mrf.mxu0 }
 0x286   : > { %1686 = vmatprep.mubr.msk.bf16.mxu1 %vm1893_vm2, %v1892_v21 }
 0x28d   : > { %1687 = vmatmul.mubr.msk.bf16.gmra.mxu1 %vm883_vm4, %v876_v45  ;;  %v862_v45 = vpop.f32.mrf.mxu0 }
 0x28e   : > { %1690 = vmatprep.mubr.msk.bf16.mxu1 %vm1893_vm2, %v1892_v21 }
 0x295   : > { %1691 = vmatmul.mubr.msk.bf16.gmra.mxu1 %vm883_vm4, %v877_v46  ;;  %v1659_v46 = vpop.f32.mrf.mxu0 }
 0x296   : > { %1726 = vmatprep.mubr.msk.bf16.mxu1 %vm1893_vm2, %v1892_v21 }
 0x335   : > { %v948_v47 = vpop.f32.mrf.mxu1 }
 0x336   : > { %v2223_v48 = vmul.f32 0.35355338, %v948_v47  ;;  %v867_v47 = vpop.f32.mrf.mxu0 }
 0x337   : > { %v1676_v49 = vpop.f32.mrf.mxu1 }
 0x338   : > { %v996_v50 = vsel %vm995_vm5, %v2223_v48, -inf  ;;  %v1894_v49 = vmov 0  }
 0x339   : > { %997 = vmax.xlane.f32.xlu0 %v996_v50  ;;  %v951_v53 = vpop.f32.mrf.mxu1  ;;  %v1123_v50 = vsel %vm1121_vm7, 65535, %v1894_v49 }
 0x33a   : > { %v2227_v54 = vmul.f32 0.35355338, %v951_v53  ;;  %v1105_v53 = vpack.c.bf16 %v867_v47, %v867_v47 }
 0x33b   : > { %v1677_v23 = vpop.f32.mrf.mxu1 }
 0x33c   : > { %v999_v55 = vsel %vm995_vm5, %v2227_v54, -inf  ;;  %v1662_v23 = vpop.f32.mrf.mxu0 }
 0x33d   : > { %1000 = vmax.xlane.f32.xlu0 %v999_v55  ;;  %v956_v56 = vpop.f32.mrf.mxu1  ;;  %v1125_v55 = vand.u32 %v1123_v50, %v1105_v53  ;;  %v1213_v53 = vld [vmem:[%s2001_s17] sm:$0xf] }
 0x33e   : > { %v2231_v57 = vmul.f32 0.35355338, %v956_v56  ;;  %v870_v56 = vpop.f32.mrf.mxu0  ;;  %v1231_v23 = vsel %vm1229_vm8, %v1213_v53, 0 }
 0x33f   : > { %v1680_v58 = vpop.f32.mrf.mxu1  ;;  %1695 = vmatpush3.bf16.msra.mxu0 %v1125_v55  ;;  %1725 = vmatpush3.bf16.msra.mxu1 %v1231_v23 }
 0x340   : > { %v1002_v60 = vsel %vm995_vm5, %v2231_v57, -inf  ;;  %v1104_v58 = vpack.c.bf16 %v862_v45, %v859_v43  ;;  %1696 = vmatprep.subr.bf16.mxu0 %v1892_v21 }
 0x341   : > { %1003 = vmax.xlane.f32.xlu1 %v1002_v60  ;;  %v959_v61 = vpop.f32.mrf.mxu1  ;;  %v1663_v60 = vpop.f32.mrf.mxu0 }
 0x342   : > { %v2235_v62 = vmul.f32 0.35355338, %v959_v61  ;;  %v1103_v61 = vpack.c.bf16 %v854_v39, %v851_v37 }
 0x343   : > { %v1681_v63 = vpop.f32.mrf.mxu1  ;;  %1697 = vmatpush3.bf16.msra.mxu0 %v1104_v58 }
 0x344   : > { %v1005_v24 = vsel %vm995_vm5, %v2235_v62, -inf  ;;  %1698 = vmatprep.subr.bf16.mxu0 %v1892_v21  ;;  %v1102_v63 = vpack.c.bf16 %v846_v35, %v843_v33 }
 0x345   : > { %1006 = vmax.xlane.f32.xlu1 %v1005_v24  ;;  %v964_v31 = vpop.f32.mrf.mxu1  ;;  %v1101_v24 = vpack.c.bf16 %v838_v29, %v835_v27 }
 0x346   : > { %v2239_v9 = vmul.f32 0.35355338, %v964_v31 }
 0x347   : > { %v1684_v10 = vpop.f32.mrf.mxu1  ;;  %1699 = vmatpush3.bf16.msra.mxu0 %v1103_v61 }
 0x348   : > { %v1008_v11 = vsel %vm995_vm5, %v2239_v9, -inf  ;;  %1700 = vmatprep.subr.bf16.mxu0 %v1892_v21 }
 0x349   : > { %1009 = vmax.xlane.f32.xlu0 %v1008_v11  ;;  %v967_v12 = vpop.f32.mrf.mxu1 }
 0x34a   : > { %v2243_v41 = vmul.f32 0.35355338, %v967_v12 }
 0x34b   : > { %v1685_v13 = vpop.f32.mrf.mxu1  ;;  %1701 = vmatpush3.bf16.msra.mxu0 %v1102_v63 }
 0x34c   : > { %v1011_v32 = vsel %vm995_vm5, %v2243_v41, -inf  ;;  %1702 = vmatprep.subr.bf16.mxu0 %v1892_v21 }
 0x34d   : > { %1012 = vmax.xlane.f32.xlu1 %v1011_v32  ;;  %v972_v14 = vpop.f32.mrf.mxu1 }
 0x34e   : > { %v2247_v15 = vmul.f32 0.35355338, %v972_v14 }
 0x34f   : > { %v1688_v16 = vpop.f32.mrf.mxu1  ;;  %1703 = vmatpush3.bf16.msra.mxu0 %v1101_v24 }
 0x350   : > { %v1014_v17 = vsel %vm995_vm5, %v2247_v15, -inf }
 0x351   : > { %1015 = vmax.xlane.f32.xlu0 %v1014_v17  ;;  %v975_v18 = vpop.f32.mrf.mxu1 }
 0x352   : > { %v2251_v51 = vmul.f32 0.35355338, %v975_v18 }
 0x353   : > { %v1689_v42 = vpop.f32.mrf.mxu1 }
 0x354   : > { %v1017_v19 = vsel %vm995_vm5, %v2251_v51, -inf }
 0x355   : > { %1018 = vmax.xlane.f32.xlu1 %v1017_v19  ;;  %v980_v20 = vpop.f32.mrf.mxu1 }
 0x356   : > { %v2255_v59 = vmul.f32 0.35355338, %v980_v20 }
 0x357   : > { %v1692_v52 = vpop.f32.mrf.mxu1 }
 0x358   : > { %v1021_v22 = vsel %vm1020_vm6, %v2255_v59, -inf }
 0x359   : > { %1022 = vmax.xlane.f32.xlu0 %v1021_v22  ;;  %v983_v25 = vpop.f32.mrf.mxu1 }
 0x35b   : > { %v1693_v26 = vpop.f32.mrf.mxu1 }
 0x3c2   : > { %v998_v31 = vpop.xlane.xlu0 %997 }
 0x3c3   : > { %v1024_v10 = vsub.f32 %v2223_v48, %v998_v31 }
 0x3c5   : > { %v1033_v11 = vmul.f32 1.442695, %v1024_v10 }
 0x3c6   : > { %v1001_v12 = vpop.xlane.xlu0 %1000 }
 0x3c7   : > { %1815 = vpow2.f32 %v1033_v11  ;;  %v1025_v13 = vsub.f32 %v2227_v54, %v1001_v12 }
 0x3c9   : > { %v1035_v32 = vmul.f32 1.442695, %v1025_v13 }
 0x3ca   : > { %v1004_v14 = vpop.xlane.xlu1 %1003 }
 0x3cb   : > { %1817 = vpow2.f32 %v1035_v32  ;;  %v1026_v16 = vsub.f32 %v2231_v57, %v1004_v14 }
 0x3cd   : > { %v1037_v17 = vmul.f32 1.442695, %v1026_v16 }
 0x3ce   : > { %v1007_v18 = vpop.xlane.xlu1 %1006 }
 0x3cf   : > { %1819 = vpow2.f32 %v1037_v17  ;;  %v1027_v42 = vsub.f32 %v2235_v62, %v1007_v18 }
 0x3d1   : > { %v1039_v19 = vmul.f32 1.442695, %v1027_v42 }
 0x3d2   : > { %v1010_v20 = vpop.xlane.xlu0 %1009 }
 0x3d3   : > { %1821 = vpow2.f32 %v1039_v19  ;;  %v1028_v48 = vsub.f32 %v2239_v9, %v1010_v20 }
 0x3d4   : > { %v1816_v52 = vpop.eup %1815 }
 0x3d5   : > { %v1041_v22 = vmul.f32 1.442695, %v1028_v48  ;;  %v1051_v25 = vsel %vm995_vm5, %v1816_v52, 0.0 }
 0x3d6   : > { %v1013_v54 = vpop.xlane.xlu1 %1012  ;;  %1052 = vadd.xlane.f32.xlu1 %v1051_v25 }
 0x3d7   : > { %1823 = vpow2.f32 %v1041_v22  ;;  %v1029_v26 = vsub.f32 %v2243_v41, %v1013_v54 }
 0x3d8   : > { %v1818_v57 = vpop.eup %1817 }
 0x3d9   : > { %v1043_v27 = vmul.f32 1.442695, %v1029_v26  ;;  %v1054_v28 = vsel %vm995_vm5, %v1818_v57, 0.0 }
 0x3da   : > { %v1016_v29 = vpop.xlane.xlu0 %1015  ;;  %1055 = vadd.xlane.f32.xlu0 %v1054_v28 }
 0x3db   : > { %1825 = vpow2.f32 %v1043_v27  ;;  %v1030_v62 = vsub.f32 %v2247_v15, %v1016_v29 }
 0x3dc   : > { %v1820_v30 = vpop.eup %1819 }
 0x3dd   : > { %v1045_v9 = vmul.f32 1.442695, %v1030_v62  ;;  %v1057_v33 = vsel %vm995_vm5, %v1820_v30, 0.0 }
 0x3de   : > { %1058 = vadd.xlane.f32.xlu1 %v1057_v33  ;;  %v1019_v34 = vpop.xlane.xlu1 %1018 }
 0x3df   : > { %1827 = vpow2.f32 %v1045_v9  ;;  %v1031_v35 = vsub.f32 %v2251_v51, %v1019_v34 }
 0x3e0   : > { %v1822_v36 = vpop.eup %1821 }
 0x3e1   : > { %v1047_v41 = vmul.f32 1.442695, %v1031_v35  ;;  %v1060_v37 = vsel %vm995_vm5, %v1822_v36, 0.0 }
 0x3e2   : > { %1061 = vadd.xlane.f32.xlu0 %v1060_v37  ;;  %v1023_v38 = vpop.xlane.xlu0 %1022 }
 0x3e3   : > { %1829 = vpow2.f32 %v1047_v41  ;;  %v1032_v39 = vsub.f32 %v2255_v59, %v1023_v38 }
 0x3e4   : > { %v1824_v40 = vpop.eup %1823 }
 0x3e5   : > { %v1049_v15 = vmul.f32 1.442695, %v1032_v39  ;;  %v1063_v43 = vsel %vm995_vm5, %v1824_v40, 0.0 }
 0x3e6   : > { %1064 = vadd.xlane.f32.xlu1 %v1063_v43 }
 0x3e7   : > { %1831 = vpow2.f32 %v1049_v15 }
 0x3e8   : > { %v1826_v44 = vpop.eup %1825 }
 0x3e9   : > { %v1066_v45 = vsel %vm995_vm5, %v1826_v44, 0.0 }
 0x3ea   : > { %1067 = vadd.xlane.f32.xlu0 %v1066_v45 }
 0x3ec   : > { %v1828_v51 = vpop.eup %1827 }
 0x3ed   : > { %v1069_v46 = vsel %vm995_vm5, %v1828_v51, 0.0 }
 0x3ee   : > { %1070 = vadd.xlane.f32.xlu1 %v1069_v46 }
 0x3f0   : > { %v1830_v47 = vpop.eup %1829 }
 0x3f1   : > { %v1072_v49 = vsel %vm995_vm5, %v1830_v47, 0.0 }
 0x3f2   : > { %1073 = vadd.xlane.f32.xlu0 %v1072_v49 }
 0x3f4   : > { %v1832_v59 = vpop.eup %1831 }
 0x3f5   : > { %v1075_v50 = vsel %vm1020_vm6, %v1832_v59, 0.0 }
 0x3f6   : > { %1076 = vadd.xlane.f32.xlu1 %v1075_v50 }
 0x45f   : > { %v1053_v55 = vpop.xlane.xlu1 %1052 }
 0x460   : > { %1833 = vrcp.f32 %v1053_v55 }
 0x463   : > { %v1056_v56 = vpop.xlane.xlu0 %1055 }
 0x464   : > { %1835 = vrcp.f32 %v1056_v56 }
 0x467   : > { %v1059_v58 = vpop.xlane.xlu1 %1058 }
 0x468   : > { %1837 = vrcp.f32 %v1059_v58 }
 0x46b   : > { %v1062_v60 = vpop.xlane.xlu0 %1061 }
 0x46c   : > { %1839 = vrcp.f32 %v1062_v60  ;;  %v1199_v60 = vld [vmem:[#allocation3] sm:$0xff] }
 0x46d   : > { %v1834_v61 = vpop.eup %1833 }
 0x46e   : > { %v1087_v31 = vmul.f32 %v1834_v61, %v1816_v52 }
 0x46f   : > { %v1065_v63 = vpop.xlane.xlu1 %1064 }
 0x470   : > { %1841 = vrcp.f32 %v1065_v63 }
 0x471   : > { %v1836_v24 = vpop.eup %1835 }
 0x472   : > { %v1088_v10 = vmul.f32 %v1836_v24, %v1818_v57 }
 0x473   : > { %v1068_v11 = vpop.xlane.xlu0 %1067 }
 0x474   : > { %v1096_v12 = vpack.c.bf16 %v1088_v10, %v1087_v31  ;;  %1843 = vrcp.f32 %v1068_v11  ;;  %v1200_v31 = vld [vmem:[#allocation3 + $0x8] sm:$0xff] }
 0x475   : > { %v1838_v13 = vpop.eup %1837 }
 0x476   : > { %1705 = vmatmul.mubr.msk.bf16.vlgmr.msra.gmra.mxu0 %vm995_vm5, %v1096_v12  ;;  %v1089_v16 = vmul.f32 %v1838_v13, %v1820_v30  ;;  %v1201_v13 = vld [vmem:[#allocation3 + $0x10] sm:$0xff] }
 0x477   : > { %v1071_v32 = vpop.xlane.xlu1 %1070  ;;  %1708 = vmatprep.mubr.msk.bf16.mxu0 %vm1893_vm2, %v1892_v21 }
 0x478   : > { %1845 = vrcp.f32 %v1071_v32 }
 0x479   : > { %v1840_v14 = vpop.eup %1839 }
 0x47a   : > { %v1090_v17 = vmul.f32 %v1840_v14, %v1822_v36 }
 0x47b   : > { %v1074_v18 = vpop.xlane.xlu0 %1073 }
 0x47c   : > { %1847 = vrcp.f32 %v1074_v18  ;;  %v1097_v42 = vpack.c.bf16 %v1090_v17, %v1089_v16  ;;  %v1202_v16 = vld [vmem:[#allocation3 + $0x18] sm:$0xff] }
 0x47d   : > { %v1842_v19 = vpop.eup %1841 }
 0x47e   : > { %1709 = vmatmul.mubr.msk.bf16.gmra.mxu0 %vm995_vm5, %v1097_v42  ;;  %v1091_v52 = vmul.f32 %v1842_v19, %v1824_v40  ;;  %v1203_v19 = vld [vmem:[#allocation3 + $0x20] sm:$0xff] }
 0x47f   : > { %v1077_v20 = vpop.xlane.xlu1 %1076  ;;  %1712 = vmatprep.mubr.msk.bf16.mxu0 %vm1893_vm2, %v1892_v21 }
 0x480   : > { %1849 = vrcp.f32 %v1077_v20 }
 0x481   : > { %v1844_v48 = vpop.eup %1843 }
 0x482   : > { %v1092_v22 = vmul.f32 %v1844_v48, %v1826_v44 }
 0x484   : > { %v1098_v25 = vpack.c.bf16 %v1092_v22, %v1091_v52  ;;  %v1204_v22 = vld [vmem:[#allocation3 + $0x28] sm:$0xff] }
 0x485   : > { %v1846_v54 = vpop.eup %1845 }
 0x486   : > { %1713 = vmatmul.mubr.msk.bf16.gmra.mxu0 %vm995_vm5, %v1098_v25  ;;  %v1093_v57 = vmul.f32 %v1846_v54, %v1828_v51 }
 0x487   : > { %1716 = vmatprep.mubr.msk.bf16.mxu0 %vm1893_vm2, %v1892_v21 }
 0x489   : > { %v1848_v26 = vpop.eup %1847 }
 0x48a   : > { %v1094_v27 = vmul.f32 %v1848_v26, %v1830_v47 }
 0x48c   : > { %v1099_v28 = vpack.c.bf16 %v1094_v27, %v1093_v57  ;;  %v1205_v57 = vld [vmem:[#allocation3 + $0x30] sm:$0xff] }
 0x48d   : > { %v1850_v29 = vpop.eup %1849 }
 0x48e   : > { %1717 = vmatmul.mubr.msk.bf16.gmra.mxu0 %vm995_vm5, %v1099_v28  ;;  %v1095_v62 = vmul.f32 %v1850_v29, %v1832_v59 }
 0x48f   : > { %1720 = vmatprep.mubr.msk.bf16.mxu0 %vm1893_vm2, %v1892_v21 }
 0x490   : > { %v1100_v30 = vpack.c.bf16 %v1095_v62, %v1095_v62  ;;  %v1206_v62 = vld [vmem:[#allocation3 + $0x38] sm:$0xff] }
 0x496   : > { %1721 = vmatmul.mubr.msk.bf16.gmra.mxu0 %vm995_vm5, %v1100_v30 }
 0x536   : > { %v1161_v9 = vpop.f32.mrf.mxu0 }
 0x538   : > { %v1706_v33 = vpop.f32.mrf.mxu0 }
 0x53a   : > { %v1164_v34 = vpop.f32.mrf.mxu0 }
 0x53b   : > { %v1208_v35 = vpack.c.bf16 %v1164_v34, %v1161_v9  ;;  %v1207_v34 = vld [vmem:[#allocation3 + $0x40] sm:$0x1] }
 0x53c   : > { %v1707_v36 = vpop.f32.mrf.mxu0 }
 0x53d   : > { %1727 = vmatmul.mubr.msk.bf16.vlgmr.msra.gmra.mxu1 %vm883_vm4, %v1208_v35 }
 0x53e   : > { %v1169_v41 = vpop.f32.mrf.mxu0  ;;  %1730 = vmatprep.mubr.msk.bf16.mxu1 %vm1893_vm2, %v1892_v21 }
 0x540   : > { %v1710_v37 = vpop.f32.mrf.mxu0 }
 0x542   : > { %v1172_v38 = vpop.f32.mrf.mxu0 }
 0x543   : > { %v1209_v39 = vpack.c.bf16 %v1172_v38, %v1169_v41 }
 0x544   : > { %v1711_v40 = vpop.f32.mrf.mxu0 }
 0x545   : > { %1731 = vmatmul.mubr.msk.bf16.gmra.mxu1 %vm883_vm4, %v1209_v39 }
 0x546   : > { %v1177_v15 = vpop.f32.mrf.mxu0  ;;  %1734 = vmatprep.mubr.msk.bf16.mxu1 %vm1893_vm2, %v1892_v21 }
 0x548   : > { %v1714_v43 = vpop.f32.mrf.mxu0 }
 0x54a   : > { %v1180_v44 = vpop.f32.mrf.mxu0 }
 0x54b   : > { %v1210_v45 = vpack.c.bf16 %v1180_v44, %v1177_v15 }
 0x54c   : > { %v1715_v51 = vpop.f32.mrf.mxu0 }
 0x54d   : > { %1735 = vmatmul.mubr.msk.bf16.gmra.mxu1 %vm883_vm4, %v1210_v45 }
 0x54e   : > { %v1185_v46 = vpop.f32.mrf.mxu0  ;;  %1738 = vmatprep.mubr.msk.bf16.mxu1 %vm1893_vm2, %v1892_v21 }
 0x550   : > { %v1718_v47 = vpop.f32.mrf.mxu0 }
 0x552   : > { %v1188_v49 = vpop.f32.mrf.mxu0 }
 0x553   : > { %v1211_v59 = vpack.c.bf16 %v1188_v49, %v1185_v46 }
 0x554   : > { %v1719_v50 = vpop.f32.mrf.mxu0 }
 0x555   : > { %1739 = vmatmul.mubr.msk.bf16.gmra.mxu1 %vm883_vm4, %v1211_v59 }
 0x556   : > { %v1193_v53 = vpop.f32.mrf.mxu0  ;;  %1742 = vmatprep.mubr.msk.bf16.mxu1 %vm1893_vm2, %v1892_v21 }
 0x557   : > { %v1212_v56 = vpack.c.bf16 %v1193_v53, %v1193_v53 }
 0x558   : > { %v1722_v23 = vpop.f32.mrf.mxu0 }
 0x55a   : > { %v1196_v55 = vpop.f32.mrf.mxu0 }
 0x55c   : > { %v1723_v58 = vpop.f32.mrf.mxu0 }
 0x55d   : > { %1743 = vmatmul.mubr.msk.bf16.gmra.mxu1 %vm883_vm4, %v1212_v56 }
 0x5fd   : > { %v1267_v61 = vpop.f32.mrf.mxu1 }
 0x5fe   : > { %v1305_v63 = vadd.f32 %v1267_v61, %v1199_v60 }
 0x5ff   : > { %v1728_v24 = vpop.f32.mrf.mxu1 }
 0x600   : > { %1314 = vst.msk [vmem:[#allocation3] sm:$0xff] %vm609_vm3, %v1305_v63 }
 0x601   : > { %v1270_v10 = vpop.f32.mrf.mxu1 }
 0x602   : > { %v1306_v11 = vadd.f32 %v1270_v10, %v1200_v31 }
 0x603   : > { %v1729_v12 = vpop.f32.mrf.mxu1 }
 0x604   : > { %1315 = vst.msk [vmem:[#allocation3 + $0x8] sm:$0xff] %vm609_vm3, %v1306_v11 }
 0x605   : > { %v1275_v21 = vpop.f32.mrf.mxu1 }
 0x606   : > { %v1307_v32 = vadd.f32 %v1275_v21, %v1201_v13 }
 0x607   : > { %v1732_v14 = vpop.f32.mrf.mxu1 }
 0x608   : > { %1316 = vst.msk [vmem:[#allocation3 + $0x10] sm:$0xff] %vm609_vm3, %v1307_v32 }
 0x609   : > { %v1278_v17 = vpop.f32.mrf.mxu1 }
 0x60a   : > { %v1308_v18 = vadd.f32 %v1278_v17, %v1202_v16 }
 0x60b   : > { %v1733_v42 = vpop.f32.mrf.mxu1 }
 0x60c   : > { %1317 = vst.msk [vmem:[#allocation3 + $0x18] sm:$0xff] %vm609_vm3, %v1308_v18 }
 0x60d   : > { %v1283_v20 = vpop.f32.mrf.mxu1 }
 0x60e   : > { %v1309_v48 = vadd.f32 %v1283_v20, %v1203_v19 }
 0x60f   : > { %v1736_v52 = vpop.f32.mrf.mxu1 }
 0x610   : > { %1318 = vst.msk [vmem:[#allocation3 + $0x20] sm:$0xff] %vm609_vm3, %v1309_v48 }
 0x611   : > { %v1286_v25 = vpop.f32.mrf.mxu1 }
 0x612   : > { %v1310_v54 = vadd.f32 %v1286_v25, %v1204_v22 }
 0x613   : > { %v1737_v26 = vpop.f32.mrf.mxu1 }
 0x614   : > { %1319 = vst.msk [vmem:[#allocation3 + $0x28] sm:$0xff] %vm609_vm3, %v1310_v54 }
 0x615   : > { %v1291_v27 = vpop.f32.mrf.mxu1 }
 0x616   : > { %v1311_v28 = vadd.f32 %v1291_v27, %v1205_v57 }
 0x617   : > { %v1740_v29 = vpop.f32.mrf.mxu1 }
 0x618   : > { %1320 = vst.msk [vmem:[#allocation3 + $0x30] sm:$0xff] %vm609_vm3, %v1311_v28 }
 0x619   : > { %v1294_v30 = vpop.f32.mrf.mxu1 }
 0x61a   : > { %v1312_v9 = vadd.f32 %v1294_v30, %v1206_v62 }
 0x61b   : > { %v1741_v33 = vpop.f32.mrf.mxu1 }
 0x61c   : > { %1321 = vst.msk [vmem:[#allocation3 + $0x38] sm:$0xff] %vm609_vm3, %v1312_v9 }
 0x61d   : > { %v1299_v35 = vpop.f32.mrf.mxu1 }
 0x61e   : > { %v1313_v36 = vadd.f32 %v1299_v35, %v1207_v34 }
 0x61f   : > { %v1744_v41 = vpop.f32.mrf.mxu1  ;;  %1327 = sbr.rel (%p1538_p8) target bundleno = 1582 (0x62e), region = 60 }
 0x620   : > { %1323 = vst.msk [vmem:[#allocation3 + $0x40] sm:$0x1] %vm1322_vm9, %v1313_v36 }
 0x621   : > { %v1302_v37 = vpop.f32.mrf.mxu1 }
 0x623   : > { %v1745_v38 = vpop.f32.mrf.mxu1 }
 0x624   : > { %v1328_v39 = vld [vmem:[#allocation3] sm:$0xff]  ;;  %v1539_v40 = vld [vmem:[%s2370_s7] ss:$0 sm:$0xff]  ;;  %v1329_v15 = vld [vmem:[#allocation3 + $0x8] sm:$0xff] }
 0x625   : > { %v1337_v43 = vadd.f32 %v1328_v39, %v1992_v0  ;;  %v1338_v44 = vadd.f32 %v1329_v15, %v1994_v1  ;;  %v1330_v45 = vld [vmem:[#allocation3 + $0x10] sm:$0xff]  ;;  %v1331_v51 = vld [vmem:[#allocation3 + $0x18] sm:$0xff]  ;;  %v1332_v46 = vld [vmem:[#allocation3 + $0x20] sm:$0xff] }
 0x626   : > { %v1339_v47 = vadd.f32 %v1330_v45, %v1996_v2  ;;  %v1340_v49 = vadd.f32 %v1331_v51, %v2008_v3  ;;  %v1341_v59 = vadd.f32 %v1332_v46, %v2010_v4  ;;  %v1333_v50 = vld [vmem:[#allocation3 + $0x28] sm:$0xff]  ;;  %v1334_v53 = vld [vmem:[#allocation3 + $0x30] sm:$0xff]  ;;  %v1335_v23 = vld [vmem:[#allocation3 + $0x38] sm:$0xff] }
 0x627   : > { %v1353_v55 = vadd.f32 %v1539_v40, %v1337_v43  ;;  %v1354_v0 = vadd.f32 %v1539_v40, %v1338_v44  ;;  %v1342_v1 = vadd.f32 %v1333_v50, %v2012_v5  ;;  %v1343_v56 = vadd.f32 %v1334_v53, %v2014_v6  ;;  %v1336_v2 = vld [vmem:[#allocation3 + $0x40] sm:$0x1] }
 0x628   : > { %v1355_v58 = vadd.f32 %v1539_v40, %v1339_v47  ;;  %v1356_v3 = vadd.f32 %v1539_v40, %v1340_v49  ;;  %v1357_v4 = vadd.f32 %v1539_v40, %v1341_v59  ;;  %v1344_v60 = vadd.f32 %v1335_v23, %v2016_v7 }
 0x629   : > { %1362 = vst.msk [vmem:[%s2006_s22] sm:$0xff] %vm609_vm3, %v1353_v55  ;;  %1363 = vst.msk [vmem:[%s2006_s22 + $0x8] sm:$0xff] %vm609_vm3, %v1354_v0  ;;  %v1358_v61 = vadd.f32 %v1539_v40, %v1342_v1  ;;  %v1359_v63 = vadd.f32 %v1539_v40, %v1343_v56  ;;  %v1345_v5 = vadd.f32 %v1336_v2, %v2018_v8 }
 0x62a   : > { %1364 = vst.msk [vmem:[%s2006_s22 + $0x10] sm:$0xff] %vm609_vm3, %v1355_v58  ;;  %1365 = vst.msk [vmem:[%s2006_s22 + $0x18] sm:$0xff] %vm609_vm3, %v1356_v3  ;;  %v1360_v6 = vadd.f32 %v1539_v40, %v1344_v60 }
 0x62b   : > { %1366 = vst.msk [vmem:[%s2006_s22 + $0x20] sm:$0xff] %vm609_vm3, %v1357_v4  ;;  %1367 = vst.msk [vmem:[%s2006_s22 + $0x28] sm:$0xff] %vm609_vm3, %v1358_v61  ;;  %v1361_v7 = vadd.f32 %v1539_v40, %v1345_v5 }
 0x62c   : > { %1368 = vst.msk [vmem:[%s2006_s22 + $0x30] sm:$0xff] %vm609_vm3, %v1359_v63  ;;  %1369 = vst.msk [vmem:[%s2006_s22 + $0x38] sm:$0xff] %vm609_vm3, %v1360_v6 }
 0x62d   : > { %1370 = vst.msk [vmem:[%s2006_s22 + $0x40] sm:$0x1] %vm1322_vm9, %v1361_v7 }
 0x62e PF: > { %s18_s9 = sadd.s32 1, %s1889_s9   ;;  %s2372_s27 = smov %s1881_s29 }
 0x62f   : > { %p15_p9 = scmp.ge.s32.totalorder %s18_s9, 10   ;;  %s2373_s28 = smov %s1885_s30 }
 0x630   : > { %s2374_s29 = smov %s2377_s10  ;;  %s2375_s30 = smov %s2381_s11 }
 0x631   :  { %17 = sbr.rel (!%p15_p9) target bundleno = 3 (0x3), region = 102 }

// kernel: vit_forward.11
= control target key start
LH: loop header
LB: loop body
LE: loop exit
PB: predicated region body
PF: predicated region fallthrough
CT: control target
= control target key end

     0   :  { %vm25_vm0 = vcmask 254976   ;;  %s237_s0 = inlined_call_operand.vmem [shape: f32[2,32], index: 0, kind: input, shape index: {}]   ;;  %s238_s1 = inlined_call_operand.vmem [shape: f32[1,32], index: 1, kind: input, shape index: {}]   ;;  %s239_s2 = inlined_call_operand.vmem [shape: f32[1,32], index: 2, kind: input, shape index: {}]   ;;  %s240_s3 = inlined_call_operand.vmem [shape: bf16[32,128], index: 3, kind: input, shape index: {}]   ;;  %s241_s4 = inlined_call_operand.vmem [shape: f32[1,128], index: 4, kind: input, shape index: {}]   ;;  %s242_s5 = inlined_call_operand.hbm [shape: f32[2,128], index: 5, kind: output, shape index: {}]  }
   0x1   :  { %v22_v0 = vld [vmem:[%s237_s0] sm:$0x3] }
   0x2   :  { %v26_v1 = vsel %vm25_vm0, %v22_v0, 0.0 }
   0x3   :  { %27 = vadd.xlane.f32.xlu0 %v26_v1 }
   0x4   :  { %10 = vsyncpa [#allocation3], 0  ;;  %v157_v7 = vld [vmem:[%s240_s3 + $0x8] sm:$0xff]   ;;  %v183_v8 = vmov 0.0   ;;  %vm184_vm1 = vmmov 0   ;;  %v158_v9 = vld [vmem:[%s240_s3] sm:$0xff]  }
   0x5   :  { %146 = vmatprep.subr.bf16.mxu0 %v183_v8  ;;  %150 = vmatprep.mubr.msk.bf16.mxu0 %vm184_vm1, %v183_v8  ;;  %v137_v14 = vld [vmem:[%s238_s1] ss:$0 sm:$0xff]  ;;  %vm78_vm2 = vcmask 261120   ;;  %s185_s28 = smov [#allocation2]  }
   0x6   :  { %147 = vmatpush3.bf16.msra.mxu0 %v157_v7  ;;  %v138_v16 = vld [vmem:[%s239_s2] ss:$0 sm:$0xff]  ;;  %s129_s29 = sshll.u32 %s185_s28, 4  ;;  %s130_s29 = int_to_ptr.vmem [resolvable:$true] %s129_s29 }
   0x7   :  { %148 = vmatprep.subr.bf16.mxu0 %v183_v8  ;;  %v139_v20 = vld [vmem:[%s241_s4] ss:$0 sm:$0xff]  ;;  %s161_s1 = scalar_lea.vmem %s130_s29, 32  ;;  %p166_p1 = scmp.lt.s32.totalorder %s130_s29, %s130_s29 }
   0x8   :  { %p162_p0 = scmp.ne.s32.totalorder %s130_s29, %s161_s1  ;;  %p167_p2 = scmp.lt.s32.totalorder %s161_s1, %s161_s1 }
   0xa   :  { %149 = vmatpush3.bf16.msra.mxu0 %v158_v9  ;;  %p168_p3 = por %p167_p2, %p166_p1 }
   0xc   :  { %p169_p4 = pnand %p168_p3, %p162_p0 }
  0x8c   :  { %v28_v2 = vpop.xlane.xlu0 %27 }
  0x8d   :  { %v30_v3 = vmul.f32 0.03125, %v28_v2 }
  0x8f   :  { %v31_v4 = vsub.f32 %v22_v0, %v30_v3 }
  0x91   :  { %v32_v5 = vmul.f32 %v31_v4, %v31_v4 }
  0x93   :  { %v33_v6 = vsel %vm25_vm0, %v32_v5, 0.0 }
  0x94   :  { %34 = vadd.xlane.f32.xlu0 %v33_v6 }
 0x11d   :  { %v35_v10 = vpop.xlane.xlu0 %34 }
 0x11e   :  { %v36_v11 = vmul.f32 0.03125, %v35_v10 }
 0x120   :  { %v37_v12 = vadd.f32 1e-05, %v36_v11 }
 0x122   :  { %159 = vrsqrt.f32 %v37_v12 }
 0x12f   :  { %v160_v13 = vpop.eup %159 }
 0x130   :  { %v39_v15 = vmul.f32 %v160_v13, %v31_v4 }
 0x132   :  { %v46_v17 = vmul.f32 %v137_v14, %v39_v15 }
 0x134   :  { %v53_v18 = vadd.f32 %v138_v16, %v46_v17 }
 0x136   :  { %v54_v19 = vpack.c.bf16 %v53_v18, %v53_v18 }
 0x138   :  { %151 = vmatmul.mubr.msk.bf16.vlgmr.msra.gmra.mxu0 %vm78_vm2, %v54_v19 }
 0x1f8   :  { %v116_v21 = vpop.f32.mrf.mxu0 }
 0x1f9   :  { %v117_v22 = vadd.f32 %v139_v20, %v116_v21 }
 0x1fa   :  { %v152_v23 = vpop.f32.mrf.mxu0 }
 0x1fb   :  { %122 = vst [vmem:[#allocation2] sm:$0x3] %v117_v22 }
 0x1fc   :  { %v119_v24 = vpop.f32.mrf.mxu0 }
 0x1fd   :  { %172 = shalt.err (!%p169_p4)
}
 0x1fe   :  { %132 = dma.vmem_to_hbm [thread:$0]  %s130_s29, 32, %s242_s5, [#allocation3]   ;;  %v153_v25 = vpop.f32.mrf.mxu0 }
 0x1ff   :  { %181 = dma.done.wait [#allocation3], 32  }
 0x200   :  { %182 = vsyncadd [#allocation3], 4294967264 }
 0x201   :  { %136 = vsyncpa [#allocation3], 1 }

</bundles_post_ra>
